<compile_context>
chip_gen: v7x
topology: tpu7x:2x2x1
jax: 0.10.0
libtpu: 0.0.40
codegen_flags: <defaults>
</compile_context>

<pallas_src>
import math

import numpy as np
import jax
import jax.numpy as jnp
from jax import lax
from jax.experimental import pallas as pl
from jax.experimental.pallas import tpu as pltpu


# ----------------------------------------------------------------------------
# Kernels
# ----------------------------------------------------------------------------
def _qkv_kernel(x_ref, wqkv_ref, bqkv_ref, q_ref, k_ref, v_ref):
    """Fused Q/K/V projection for one BT row tile.

    x_ref:    [tm, D]   f32 activations
    wqkv_ref: [D, 3D]   bf16 packed [wq*scale | wk | wv] (resident across grid)
    bqkv_ref: [1, 3D]   f32  packed [bq*scale | bk | bv]
    q/k/v:    [tm, D]   bf16 outputs (halves HBM traffic to the next kernel)
    """
    D = q_ref.shape[1]
    x = x_ref[...].astype(jnp.bfloat16)
    qkv = jnp.dot(x, wqkv_ref[...], preferred_element_type=jnp.float32)
    qkv = qkv + bqkv_ref[...]
    q_ref[...] = qkv[:, :D].astype(q_ref.dtype)
    k_ref[...] = qkv[:, D:2 * D].astype(k_ref.dtype)
    v_ref[...] = qkv[:, 2 * D:].astype(v_ref.dtype)


def _attn_kernel(q_ref, k_ref, v_ref, o_ref):
    """Scaled dot-product attention for one tile of head-groups.

    q/k/v: [gt, T, dph] bf16 (scale already folded into q).
    Scores / softmax in f32; PV matmul back in bf16 with f32 accumulation.
    NOTE: at realistic T (>=128) the [gt, T, T] score tile is lane-dense; for
    long sequences replace this with an online-softmax loop over KV tiles.
    """
    q = q_ref[...]
    k = k_ref[...]
    v = v_ref[...]
    # scores[g, t, s] = sum_d q[g,t,d] * k[g,s,d]  (no k.T materialization)
    s = lax.dot_general(q, k, (((2,), (2,)), ((0,), (0,))),
                        preferred_element_type=jnp.float32)        # [gt, T, T]
    s = s - jnp.max(s, axis=-1, keepdims=True)                     # stable softmax (dim=2)
    p = jnp.exp(s)
    denom = jnp.sum(p, axis=-1, keepdims=True)
    p = p * pl.reciprocal(denom, approx=True)                      # EUP divide
    ctx = lax.dot_general(p.astype(v.dtype), v, (((2,), (1,)), ((0,), (0,))),
                          preferred_element_type=jnp.float32)      # [gt, T, dph]
    o_ref[...] = ctx.astype(o_ref.dtype)


def _layer_norm(x, gamma, beta, eps=1e-5):
    mean = jnp.mean(x, axis=-1, keepdims=True)
    var = jnp.mean((x - mean) ** 2, axis=-1, keepdims=True)
    return (x - mean) * lax.rsqrt(var + eps) * gamma + beta


def _gelu_tanh(x):
    # Exactly the module's GELU (tanh approximation).
    c = math.sqrt(2.0 / math.pi)
    return 0.5 * x * (1.0 + jnp.tanh(c * (x + 0.044715 * x * x * x)))


def _final_kernel(x_ref, ctx_ref, wo_ref, bo_ref, g1_ref, be1_ref,
                  w1_ref, bf1_ref, w2_ref, bf2_ref, g2_ref, be2_ref, o_ref):
    """linear_final + residual + LN, then position-wise FFN + residual + LN.

    Operates on one BT row tile; weights are grid-resident bf16, all
    elementwise math (LN stats, GELU, residuals) stays in f32.
    """
    x = x_ref[...]                                                 # f32 residual
    ctx = ctx_ref[...].astype(jnp.bfloat16)

    # MultiHeadAttention tail: LayerNorm(residual + linear_final(context))
    attn_out = jnp.dot(ctx, wo_ref[...],
                       preferred_element_type=jnp.float32) + bo_ref[...]
    a = _layer_norm(x + attn_out, g1_ref[...], be1_ref[...])

    # PositionalWiseFeedForward: LayerNorm(a + w2(gelu(w1(a)))); Conv1d k=1 == matmul
    h = jnp.dot(a.astype(jnp.bfloat16), w1_ref[...],
                preferred_element_type=jnp.float32) + bf1_ref[...]
    h = _gelu_tanh(h)
    f = jnp.dot(h.astype(jnp.bfloat16), w2_ref[...],
                preferred_element_type=jnp.float32) + bf2_ref[...]
    o_ref[...] = _layer_norm(a + f, g2_ref[...], be2_ref[...])


# ----------------------------------------------------------------------------
# One-time parameter preparation (outside the per-call path)
# ----------------------------------------------------------------------------
def prepare_params(params, num_heads):
    """Fold the quirky reference scale into the Q projection, pack wq|wk|wv
    into a single [D, 3D] weight, and cast matmul weights to bf16
    (MXU-native on v5e/v6e/v7x, halves weight VMEM/DMA footprint)."""
    D = params["wq"].shape[0]
    H = num_heads
    dph = D // H
    if dph // H < 1:
        raise ValueError(
            "reference quirk scale=(dim_per_head // num_heads)**-0.5 requires "
            f"dim_per_head >= num_heads (got dph={dph}, H={H})")
    scale = float((dph // H) ** (-0.5))
    f32, bf16 = jnp.float32, jnp.bfloat16
    wqkv = jnp.concatenate([params["wq"] * scale, params["wk"], params["wv"]],
                           axis=1)
    bqkv = jnp.concatenate([params["bq"] * scale, params["bk"], params["bv"]],
                           axis=1)
    return {
        "wqkv": wqkv.astype(bf16), "bqkv": bqkv.astype(f32),
        "wo": params["wo"].astype(bf16), "bo": params["bo"].astype(f32),
        "g1": params["g1"].astype(f32), "be1": params["be1"].astype(f32),
        "w1": params["w1"].astype(bf16), "bf1": params["bf1"].astype(f32),
        "w2": params["w2"].astype(bf16), "bf2": params["bf2"].astype(f32),
        "g2": params["g2"].astype(f32), "be2": params["be2"].astype(f32),
    }


def _vmem_limit_bytes(tiles):
    """Scoped-VMEM limit derived from the per-step tile footprint:
    x2 for double-buffering plus slack, clamped to sane bounds."""
    total = 0
    for shape, dtype in tiles:
        total += int(np.prod(shape)) * np.dtype(dtype).itemsize
    est = 2 * total + (2 << 20)
    return int(min(max(est, 8 << 20), 100 << 20))


# ----------------------------------------------------------------------------
# Wrapper
# ----------------------------------------------------------------------------
def encoder_layer_pallas(x, prep, num_heads, *, bt_tile=256, g_tile=8):
    B, T, D = x.shape
    H = num_heads
    dph = D // H
    FF = prep["w1"].shape[1]
    BT = B * T
    G = B * H

    bt_tile = min(bt_tile, BT)
    if BT % bt_tile != 0:
        bt_tile = BT
    g_tile = min(g_tile, G)
    if G % g_tile != 0:
        g_tile = G

    f32, bf16 = jnp.float32, jnp.bfloat16
    x2d = x.reshape(BT, D).astype(f32)

    # --- fused QKV projection, tiled over BT (parallel -> both v7x TCs) ------
    qkv_cp = pltpu.CompilerParams(
        dimension_semantics=("parallel",),
        vmem_limit_bytes=_vmem_limit_bytes([
            ((bt_tile, D), f32), ((D, 3 * D), bf16), ((1, 3 * D), f32),
            ((bt_tile, 3 * D), f32),
            ((bt_tile, D), bf16), ((bt_tile, D), bf16), ((bt_tile, D), bf16)]))
    q2d, k2d, v2d = pl.pallas_call(
        _qkv_kernel,
        out_shape=(jax.ShapeDtypeStruct((BT, D), bf16),
                   jax.ShapeDtypeStruct((BT, D), bf16),
                   jax.ShapeDtypeStruct((BT, D), bf16)),
        grid=(BT // bt_tile,),
        in_specs=[pl.BlockSpec((bt_tile, D), lambda i: (i, 0)),   # x rows
                  pl.BlockSpec((D, 3 * D), lambda i: (0, 0)),     # packed W (resident)
                  pl.BlockSpec((1, 3 * D), lambda i: (0, 0))],    # packed bias
        out_specs=(pl.BlockSpec((bt_tile, D), lambda i: (i, 0)),
                   pl.BlockSpec((bt_tile, D), lambda i: (i, 0)),
                   pl.BlockSpec((bt_tile, D), lambda i: (i, 0))),
        compiler_params=qkv_cp,
    )(x2d, prep["wqkv"], prep["bqkv"])

    # Reference quirk: key.view(B*H, -1, dph) is a raw row-major view.
    # [BT, D] -> [G, T, dph] preserves the linear layout -> free XLA reshape.
    qh = q2d.reshape(G, T, dph)
    kh = k2d.reshape(G, T, dph)
    vh = v2d.reshape(G, T, dph)

    # --- scaled dot-product attention, tiled over head-groups ----------------
    attn_cp = pltpu.CompilerParams(
        dimension_semantics=("parallel",),
        vmem_limit_bytes=_vmem_limit_bytes(
            [((g_tile, T, dph), bf16)] * 4 + [((g_tile, T, T), f32)] * 2))
    ctx_h = pl.pallas_call(
        _attn_kernel,
        out_shape=jax.ShapeDtypeStruct((G, T, dph), bf16),
        grid=(G // g_tile,),
        in_specs=[pl.BlockSpec((g_tile, T, dph), lambda g: (g, 0, 0)),
                  pl.BlockSpec((g_tile, T, dph), lambda g: (g, 0, 0)),
                  pl.BlockSpec((g_tile, T, dph), lambda g: (g, 0, 0))],
        out_specs=pl.BlockSpec((g_tile, T, dph), lambda g: (g, 0, 0)),
        compiler_params=attn_cp,
    )(qh, kh, vh)

    # context.view(batch, -1, dph * num_heads) -> flat [BT, D]; again free.
    ctx2d = ctx_h.reshape(BT, D)

    # --- linear_final + residual + LN + FFN + residual + LN, tiled over BT ----
    final_cp = pltpu.CompilerParams(
        dimension_semantics=("parallel",),
        vmem_limit_bytes=_vmem_limit_bytes([
            ((bt_tile, D), f32), ((bt_tile, D), bf16),
            ((D, D), bf16), ((1, D), f32), ((1, D), f32), ((1, D), f32),
            ((D, FF), bf16), ((1, FF), f32), ((FF, D), bf16), ((1, D), f32),
            ((1, D), f32), ((1, D), f32),
            ((bt_tile, FF), f32), ((bt_tile, FF), f32),
            ((bt_tile, D), f32)]))
    out2d = pl.pallas_call(
        _final_kernel,
        out_shape=jax.ShapeDtypeStruct((BT, D), f32),
        grid=(BT // bt_tile,),
        in_specs=[pl.BlockSpec((bt_tile, D), lambda i: (i, 0)),   # residual (inputs)
                  pl.BlockSpec((bt_tile, D), lambda i: (i, 0)),   # context
                  pl.BlockSpec((D, D), lambda i: (0, 0)),         # wo (resident)
                  pl.BlockSpec((1, D), lambda i: (0, 0)),         # bo
                  pl.BlockSpec((1, D), lambda i: (0, 0)),         # ln1 gamma
                  pl.BlockSpec((1, D), lambda i: (0, 0)),         # ln1 beta
                  pl.BlockSpec((D, FF), lambda i: (0, 0)),        # w1 (Conv1d k=1)
                  pl.BlockSpec((1, FF), lambda i: (0, 0)),        # b1
                  pl.BlockSpec((FF, D), lambda i: (0, 0)),        # w2 (Conv1d k=1)
                  pl.BlockSpec((1, D), lambda i: (0, 0)),         # b2
                  pl.BlockSpec((1, D), lambda i: (0, 0)),         # ln2 gamma
                  pl.BlockSpec((1, D), lambda i: (0, 0))],        # ln2 beta
        out_specs=pl.BlockSpec((bt_tile, D), lambda i: (i, 0)),
        compiler_params=final_cp,
    )(x2d, ctx2d, prep["wo"], prep["bo"], prep["g1"], prep["be1"],
      prep["w1"], prep["bf1"], prep["w2"], prep["bf2"],
      prep["g2"], prep["be2"])

    return out2d.reshape(B, T, D)


# ----------------------------------------------------------------------------
# Pure-JAX reference (mirrors the PyTorch forward exactly, all f32)
# ----------------------------------------------------------------------------
def encoder_layer_ref(x, params, num_heads):
    B, T, D = x.shape
    H = num_heads
    dph = D // H

    q = x @ params["wq"] + params["bq"]
    k = x @ params["wk"] + params["bk"]
    v = x @ params["wv"] + params["bv"]
    qh = q.reshape(B * H, T, dph)
    kh = k.reshape(B * H, T, dph)
    vh = v.reshape(B * H, T, dph)
    scale = (dph // H) ** (-0.5)
    attn = jnp.einsum("gtd,gsd->gts", qh, kh) * scale
    attn = jax.nn.softmax(attn, axis=2)
    ctx = jnp.einsum("gts,gsd->gtd", attn, vh).reshape(B, T, D)

    out = ctx @ params["wo"] + params["bo"]
    a = _layer_norm(x + out, params["g1"], params["be1"])

    h = _gelu_tanh(a @ params["w1"] + params["bf1"])
    f = h @ params["w2"] + params["bf2"]
    return _layer_norm(a + f, params["g2"], params["be2"])


# ----------------------------------------------------------------------------
if __name__ == "__main__":
    # model_dim=128, num_heads=4, ffn_dim=256; B*T=32 so the BT/G grids have
    # 2 steps each (exercises the pipelined index maps even at toy scale).
    B, T, D, H, FF = 4, 8, 128, 4, 256

    key = jax.random.PRNGKey(0)
    ks = jax.random.split(key, 12)

    def w(k, shape, s=0.05):
        return jax.random.normal(k, shape, dtype=jnp.float32) * s

    params = {
        "wq": w(ks[0], (D, D)),  "bq": w(ks[1], (1, D)),
        "wk": w(ks[2], (D, D)),  "bk": w(ks[3], (1, D)),
        "wv": w(ks[4], (D, D)),  "bv": w(ks[5], (1, D)),
        "wo": w(ks[6], (D, D)),  "bo": w(ks[7], (1, D)),
        "g1": jnp.ones((1, D), jnp.float32),  "be1": jnp.zeros((1, D), jnp.float32),
        "w1": w(ks[8], (D, FF)), "bf1": w(ks[9], (1, FF)),
        "w2": w(ks[10], (FF, D)), "bf2": w(ks[11], (1, D)),
        "g2": jnp.ones((1, D), jnp.float32),  "be2": jnp.zeros((1, D), jnp.float32),
    }

    x = jax.random.normal(jax.random.PRNGKey(42), (B, T, D), dtype=jnp.float32)

    prep = prepare_params(params, num_heads=H)   # one-time prep (scale fold, pack, bf16)

    fwd = jax.jit(lambda xx, pp: encoder_layer_pallas(
        xx, pp, num_heads=H, bt_tile=16, g_tile=8))
    out = jax.block_until_ready(fwd(x, prep))

    ref = jax.block_until_ready(encoder_layer_ref(x, params, num_heads=H))
    assert out.shape == (B, T, D)
    err = float(jnp.max(jnp.abs(out - ref)))
    # bf16 MXU operands + approx reciprocal -> relaxed (but tight) tolerance.
    assert jnp.allclose(out, ref, rtol=3e-2, atol=3e-2), f"max abs err {err}"

    print("KERNEL_OK")
</pallas_src>

<mosaic_0001>
module attributes {stable_mosaic.version = 11 : i64} {
  func.func @_qkv_kernel(%arg0: i32, %arg1: memref<16x128xf32, #tpu.memory_space<vmem>>, %arg2: memref<128x384xbf16, #tpu.memory_space<vmem>>, %arg3: memref<1x384xf32, #tpu.memory_space<vmem>>, %arg4: memref<16x128xbf16, #tpu.memory_space<vmem>>, %arg5: memref<16x128xbf16, #tpu.memory_space<vmem>>, %arg6: memref<16x128xbf16, #tpu.memory_space<vmem>>) attributes {dimension_semantics = [#tpu.dimension_semantics<parallel>], iteration_bounds = array<i64: 2>, scalar_prefetch = 0 : i64, scratch_operands = 0 : i64, tpu.core_type = #tpu.core_type<tc>, window_params = [{transform_indices = @transform_0, window_bounds = array<i64: 16, 128>}, {pipeline_mode = #tpu.pipeline_mode<synchronous>, transform_indices = @transform_1, window_bounds = array<i64: 128, 384>}, {pipeline_mode = #tpu.pipeline_mode<synchronous>, transform_indices = @transform_2, window_bounds = array<i64: 1, 384>}, {transform_indices = @transform_3, window_bounds = array<i64: 16, 128>}, {transform_indices = @transform_4, window_bounds = array<i64: 16, 128>}, {transform_indices = @transform_5, window_bounds = array<i64: 16, 128>}]} {
    %c0 = arith.constant 0 : index
    %c0_0 = arith.constant 0 : index
    %0 = vector.load %arg1[%c0, %c0_0] : memref<16x128xf32, #tpu.memory_space<vmem>>, vector<16x128xf32>
    %1 = arith.truncf %0 : vector<16x128xf32> to vector<16x128xbf16>
    %c0_1 = arith.constant 0 : index
    %c0_2 = arith.constant 0 : index
    %2 = vector.load %arg2[%c0_1, %c0_2] : memref<128x384xbf16, #tpu.memory_space<vmem>>, vector<128x384xbf16>
    %cst = arith.constant dense<0.000000e+00> : vector<16x384xf32>
    %3 = tpu.matmul %1, %2, %cst {dimension_numbers = #tpu.dot_dimension_numbers<[1], [0], [0], [1], [0, 0, 1, 1], [], []>} : vector<16x128xbf16>, vector<128x384xbf16>, vector<16x384xf32> -> vector<16x384xf32>
    %c0_3 = arith.constant 0 : index
    %c0_4 = arith.constant 0 : index
    %4 = vector.load %arg3[%c0_3, %c0_4] : memref<1x384xf32, #tpu.memory_space<vmem>>, vector<1x384xf32>
    %5 = vector.broadcast %4 : vector<1x384xf32> to vector<16x384xf32>
    %6 = arith.addf %3, %5 : vector<16x384xf32>
    %7 = vector.extract_strided_slice %6 {offsets = [0, 0], sizes = [16, 128], strides = [1, 1]} : vector<16x384xf32> to vector<16x128xf32>
    %8 = arith.truncf %7 : vector<16x128xf32> to vector<16x128xbf16>
    %c0_5 = arith.constant 0 : index
    %c0_6 = arith.constant 0 : index
    %9 = vector.load %arg4[%c0_5, %c0_6] : memref<16x128xbf16, #tpu.memory_space<vmem>>, vector<16x128xbf16>
    tpu.vector_store %arg4[%c0_5, %c0_6], %8 {strides = array<i32>} : memref<16x128xbf16, #tpu.memory_space<vmem>>, vector<16x128xbf16>,
    %10 = vector.extract_strided_slice %6 {offsets = [0, 128], sizes = [16, 128], strides = [1, 1]} : vector<16x384xf32> to vector<16x128xf32>
    %11 = arith.truncf %10 : vector<16x128xf32> to vector<16x128xbf16>
    %c0_7 = arith.constant 0 : index
    %c0_8 = arith.constant 0 : index
    %12 = vector.load %arg5[%c0_7, %c0_8] : memref<16x128xbf16, #tpu.memory_space<vmem>>, vector<16x128xbf16>
    tpu.vector_store %arg5[%c0_7, %c0_8], %11 {strides = array<i32>} : memref<16x128xbf16, #tpu.memory_space<vmem>>, vector<16x128xbf16>,
    %13 = vector.extract_strided_slice %6 {offsets = [0, 256], sizes = [16, 128], strides = [1, 1]} : vector<16x384xf32> to vector<16x128xf32>
    %14 = arith.truncf %13 : vector<16x128xf32> to vector<16x128xbf16>
    %c0_9 = arith.constant 0 : index
    %c0_10 = arith.constant 0 : index
    %15 = vector.load %arg6[%c0_9, %c0_10] : memref<16x128xbf16, #tpu.memory_space<vmem>>, vector<16x128xbf16>
    tpu.vector_store %arg6[%c0_9, %c0_10], %14 {strides = array<i32>} : memref<16x128xbf16, #tpu.memory_space<vmem>>, vector<16x128xbf16>,
    return
  }
  func.func @transform_0(%arg0: i32) -> (i32, i32) {
    %c0_i32 = arith.constant 0 : i32
    %c0_i32_0 = arith.constant 0 : i32
    return %arg0, %c0_i32 : i32, i32
  }
  func.func @transform_1(%arg0: i32) -> (i32, i32) {
    %c0_i32 = arith.constant 0 : i32
    %c0_i32_0 = arith.constant 0 : i32
    %c0_i32_1 = arith.constant 0 : i32
    return %c0_i32, %c0_i32_0 : i32, i32
  }
  func.func @transform_2(%arg0: i32) -> (i32, i32) {
    %c0_i32 = arith.constant 0 : i32
    %c0_i32_0 = arith.constant 0 : i32
    %c0_i32_1 = arith.constant 0 : i32
    return %c0_i32, %c0_i32_0 : i32, i32
  }
  func.func @transform_3(%arg0: i32) -> (i32, i32) {
    %c0_i32 = arith.constant 0 : i32
    %c0_i32_0 = arith.constant 0 : i32
    return %arg0, %c0_i32 : i32, i32
  }
  func.func @transform_4(%arg0: i32) -> (i32, i32) {
    %c0_i32 = arith.constant 0 : i32
    %c0_i32_0 = arith.constant 0 : i32
    return %arg0, %c0_i32 : i32, i32
  }
  func.func @transform_5(%arg0: i32) -> (i32, i32) {
    %c0_i32 = arith.constant 0 : i32
    %c0_i32_0 = arith.constant 0 : i32
    return %arg0, %c0_i32 : i32, i32
  }
}

module attributes {stable_mosaic.version = 11 : i64} {
  func.func @_attn_kernel(%arg0: i32, %arg1: memref<8x8x32xbf16, #tpu.memory_space<vmem>>, %arg2: memref<8x8x32xbf16, #tpu.memory_space<vmem>>, %arg3: memref<8x8x32xbf16, #tpu.memory_space<vmem>>, %arg4: memref<8x8x32xbf16, #tpu.memory_space<vmem>>) attributes {dimension_semantics = [#tpu.dimension_semantics<parallel>], iteration_bounds = array<i64: 2>, scalar_prefetch = 0 : i64, scratch_operands = 0 : i64, tpu.core_type = #tpu.core_type<tc>, window_params = [{transform_indices = @transform_0, window_bounds = array<i64: 8, 8, 32>}, {transform_indices = @transform_1, window_bounds = array<i64: 8, 8, 32>}, {transform_indices = @transform_2, window_bounds = array<i64: 8, 8, 32>}, {transform_indices = @transform_3, window_bounds = array<i64: 8, 8, 32>}]} {
    %c0 = arith.constant 0 : index
    %c0_0 = arith.constant 0 : index
    %c0_1 = arith.constant 0 : index
    %0 = vector.load %arg1[%c0, %c0_0, %c0_1] : memref<8x8x32xbf16, #tpu.memory_space<vmem>>, vector<8x8x32xbf16>
    %c0_2 = arith.constant 0 : index
    %c0_3 = arith.constant 0 : index
    %c0_4 = arith.constant 0 : index
    %1 = vector.load %arg2[%c0_2, %c0_3, %c0_4] : memref<8x8x32xbf16, #tpu.memory_space<vmem>>, vector<8x8x32xbf16>
    %c0_5 = arith.constant 0 : index
    %c0_6 = arith.constant 0 : index
    %c0_7 = arith.constant 0 : index
    %2 = vector.load %arg3[%c0_5, %c0_6, %c0_7] : memref<8x8x32xbf16, #tpu.memory_space<vmem>>, vector<8x8x32xbf16>
    %cst = arith.constant dense<0.000000e+00> : vector<8x8x8xf32>
    %3 = tpu.matmul %0, %1, %cst {dimension_numbers = #tpu.dot_dimension_numbers<[2], [2], [1], [1], [0, 0, 0, 1, 1, 1], [0], [0]>} : vector<8x8x32xbf16>, vector<8x8x32xbf16>, vector<8x8x8xf32> -> vector<8x8x8xf32>
    %cst_8 = arith.constant dense<0xFF800000> : vector<8x8xf32>
    %4 = vector.multi_reduction <maximumf>, %3, %cst_8 [2] : vector<8x8x8xf32> to vector<8x8xf32>
    %5 = vector.shape_cast %4 : vector<8x8xf32> to vector<8x8x1xf32>
    %6 = vector.broadcast %5 : vector<8x8x1xf32> to vector<8x8x8xf32>
    %7 = arith.subf %3, %6 : vector<8x8x8xf32>
    %8 = math.exp %7 : vector<8x8x8xf32>
    %cst_9 = arith.constant dense<0.000000e+00> : vector<8x8xf32>
    %9 = vector.multi_reduction <add>, %8, %cst_9 [2] : vector<8x8x8xf32> to vector<8x8xf32>
    %10 = vector.shape_cast %9 : vector<8x8xf32> to vector<8x8x1xf32>
    %11 = tpu.reciprocal %10 {approx = true} : vector<8x8x1xf32> -> vector<8x8x1xf32>
    %12 = vector.broadcast %11 : vector<8x8x1xf32> to vector<8x8x8xf32>
    %13 = arith.mulf %8, %12 : vector<8x8x8xf32>
    %14 = arith.truncf %13 : vector<8x8x8xf32> to vector<8x8x8xbf16>
    %cst_10 = arith.constant dense<0.000000e+00> : vector<8x8x32xf32>
    %15 = tpu.matmul %14, %2, %cst_10 {dimension_numbers = #tpu.dot_dimension_numbers<[2], [1], [1], [2], [0, 0, 0, 1, 1, 2], [0], [0]>} : vector<8x8x8xbf16>, vector<8x8x32xbf16>, vector<8x8x32xf32> -> vector<8x8x32xf32>
    %16 = arith.truncf %15 : vector<8x8x32xf32> to vector<8x8x32xbf16>
    %c0_11 = arith.constant 0 : index
    %c0_12 = arith.constant 0 : index
    %c0_13 = arith.constant 0 : index
    %17 = vector.load %arg4[%c0_11, %c0_12, %c0_13] : memref<8x8x32xbf16, #tpu.memory_space<vmem>>, vector<8x8x32xbf16>
    tpu.vector_store %arg4[%c0_11, %c0_12, %c0_13], %16 {strides = array<i32>} : memref<8x8x32xbf16, #tpu.memory_space<vmem>>, vector<8x8x32xbf16>,
    return
  }
  func.func @transform_0(%arg0: i32) -> (i32, i32, i32) {
    %c0_i32 = arith.constant 0 : i32
    %c0_i32_0 = arith.constant 0 : i32
    %c0_i32_1 = arith.constant 0 : i32
    return %arg0, %c0_i32, %c0_i32_0 : i32, i32, i32
  }
  func.func @transform_1(%arg0: i32) -> (i32, i32, i32) {
    %c0_i32 = arith.constant 0 : i32
    %c0_i32_0 = arith.constant 0 : i32
    %c0_i32_1 = arith.constant 0 : i32
    return %arg0, %c0_i32, %c0_i32_0 : i32, i32, i32
  }
  func.func @transform_2(%arg0: i32) -> (i32, i32, i32) {
    %c0_i32 = arith.constant 0 : i32
    %c0_i32_0 = arith.constant 0 : i32
    %c0_i32_1 = arith.constant 0 : i32
    return %arg0, %c0_i32, %c0_i32_0 : i32, i32, i32
  }
  func.func @transform_3(%arg0: i32) -> (i32, i32, i32) {
    %c0_i32 = arith.constant 0 : i32
    %c0_i32_0 = arith.constant 0 : i32
    %c0_i32_1 = arith.constant 0 : i32
    return %arg0, %c0_i32, %c0_i32_0 : i32, i32, i32
  }
}

module attributes {stable_mosaic.version = 11 : i64} {
  func.func @_final_kernel(%arg0: i32, %arg1: memref<16x128xf32, #tpu.memory_space<vmem>>, %arg2: memref<16x128xbf16, #tpu.memory_space<vmem>>, %arg3: memref<128x128xbf16, #tpu.memory_space<vmem>>, %arg4: memref<1x128xf32, #tpu.memory_space<vmem>>, %arg5: memref<1x128xf32, #tpu.memory_space<vmem>>, %arg6: memref<1x128xf32, #tpu.memory_space<vmem>>, %arg7: memref<128x256xbf16, #tpu.memory_space<vmem>>, %arg8: memref<1x256xf32, #tpu.memory_space<vmem>>, %arg9: memref<256x128xbf16, #tpu.memory_space<vmem>>, %arg10: memref<1x128xf32, #tpu.memory_space<vmem>>, %arg11: memref<1x128xf32, #tpu.memory_space<vmem>>, %arg12: memref<1x128xf32, #tpu.memory_space<vmem>>, %arg13: memref<16x128xf32, #tpu.memory_space<vmem>>) attributes {dimension_semantics = [#tpu.dimension_semantics<parallel>], iteration_bounds = array<i64: 2>, scalar_prefetch = 0 : i64, scratch_operands = 0 : i64, tpu.core_type = #tpu.core_type<tc>, window_params = [{transform_indices = @transform_0, window_bounds = array<i64: 16, 128>}, {transform_indices = @transform_1, window_bounds = array<i64: 16, 128>}, {pipeline_mode = #tpu.pipeline_mode<synchronous>, transform_indices = @transform_2, window_bounds = array<i64: 128, 128>}, {pipeline_mode = #tpu.pipeline_mode<synchronous>, transform_indices = @transform_3, window_bounds = array<i64: 1, 128>}, {pipeline_mode = #tpu.pipeline_mode<synchronous>, transform_indices = @transform_4, window_bounds = array<i64: 1, 128>}, {pipeline_mode = #tpu.pipeline_mode<synchronous>, transform_indices = @transform_5, window_bounds = array<i64: 1, 128>}, {pipeline_mode = #tpu.pipeline_mode<synchronous>, transform_indices = @transform_6, window_bounds = array<i64: 128, 256>}, {pipeline_mode = #tpu.pipeline_mode<synchronous>, transform_indices = @transform_7, window_bounds = array<i64: 1, 256>}, {pipeline_mode = #tpu.pipeline_mode<synchronous>, transform_indices = @transform_8, window_bounds = array<i64: 256, 128>}, {pipeline_mode = #tpu.pipeline_mode<synchronous>, transform_indices = @transform_9, window_bounds = array<i64: 1, 128>}, {pipeline_mode = #tpu.pipeline_mode<synchronous>, transform_indices = @transform_10, window_bounds = array<i64: 1, 128>}, {pipeline_mode = #tpu.pipeline_mode<synchronous>, transform_indices = @transform_11, window_bounds = array<i64: 1, 128>}, {transform_indices = @transform_12, window_bounds = array<i64: 16, 128>}]} {
    %c0 = arith.constant 0 : index
    %c0_0 = arith.constant 0 : index
    %0 = vector.load %arg1[%c0, %c0_0] : memref<16x128xf32, #tpu.memory_space<vmem>>, vector<16x128xf32>
    %c0_1 = arith.constant 0 : index
    %c0_2 = arith.constant 0 : index
    %1 = vector.load %arg2[%c0_1, %c0_2] : memref<16x128xbf16, #tpu.memory_space<vmem>>, vector<16x128xbf16>
    %c0_3 = arith.constant 0 : index
    %c0_4 = arith.constant 0 : index
    %2 = vector.load %arg3[%c0_3, %c0_4] : memref<128x128xbf16, #tpu.memory_space<vmem>>, vector<128x128xbf16>
    %cst = arith.constant dense<0.000000e+00> : vector<16x128xf32>
    %3 = tpu.matmul %1, %2, %cst {dimension_numbers = #tpu.dot_dimension_numbers<[1], [0], [0], [1], [0, 0, 1, 1], [], []>} : vector<16x128xbf16>, vector<128x128xbf16>, vector<16x128xf32> -> vector<16x128xf32>
    %c0_5 = arith.constant 0 : index
    %c0_6 = arith.constant 0 : index
    %4 = vector.load %arg4[%c0_5, %c0_6] : memref<1x128xf32, #tpu.memory_space<vmem>>, vector<1x128xf32>
    %5 = vector.broadcast %4 : vector<1x128xf32> to vector<16x128xf32>
    %6 = arith.addf %3, %5 : vector<16x128xf32>
    %7 = arith.addf %0, %6 : vector<16x128xf32>
    %c0_7 = arith.constant 0 : index
    %c0_8 = arith.constant 0 : index
    %8 = vector.load %arg5[%c0_7, %c0_8] : memref<1x128xf32, #tpu.memory_space<vmem>>, vector<1x128xf32>
    %c0_9 = arith.constant 0 : index
    %c0_10 = arith.constant 0 : index
    %9 = vector.load %arg6[%c0_9, %c0_10] : memref<1x128xf32, #tpu.memory_space<vmem>>, vector<1x128xf32>
    %cst_11 = arith.constant dense<0.000000e+00> : vector<16xf32>
    %10 = vector.multi_reduction <add>, %7, %cst_11 [1] : vector<16x128xf32> to vector<16xf32>
    %11 = vector.shape_cast %10 : vector<16xf32> to vector<16x1xf32>
    %cst_12 = arith.constant 1.280000e+02 : f32
    %12 = vector.broadcast %cst_12 : f32 to vector<16x1xf32>
    %13 = arith.divf %11, %12 : vector<16x1xf32>
    %14 = vector.broadcast %13 : vector<16x1xf32> to vector<16x128xf32>
    %15 = arith.subf %7, %14 : vector<16x128xf32>
    %16 = arith.mulf %15, %15 : vector<16x128xf32>
    %cst_13 = arith.constant dense<0.000000e+00> : vector<16xf32>
    %17 = vector.multi_reduction <add>, %16, %cst_13 [1] : vector<16x128xf32> to vector<16xf32>
    %18 = vector.shape_cast %17 : vector<16xf32> to vector<16x1xf32>
    %cst_14 = arith.constant 1.280000e+02 : f32
    %19 = vector.broadcast %cst_14 : f32 to vector<16x1xf32>
    %20 = arith.divf %18, %19 : vector<16x1xf32>
    %21 = vector.broadcast %13 : vector<16x1xf32> to vector<16x128xf32>
    %22 = arith.subf %7, %21 : vector<16x128xf32>
    %cst_15 = arith.constant 9.99999974E-6 : f32
    %23 = vector.broadcast %cst_15 : f32 to vector<16x1xf32>
    %24 = arith.addf %20, %23 : vector<16x1xf32>
    %25 = math.rsqrt %24 : vector<16x1xf32>
    %26 = vector.broadcast %25 : vector<16x1xf32> to vector<16x128xf32>
    %27 = arith.mulf %22, %26 : vector<16x128xf32>
    %28 = vector.broadcast %8 : vector<1x128xf32> to vector<16x128xf32>
    %29 = arith.mulf %27, %28 : vector<16x128xf32>
    %30 = vector.broadcast %9 : vector<1x128xf32> to vector<16x128xf32>
    %31 = arith.addf %29, %30 : vector<16x128xf32>
    %32 = arith.truncf %31 : vector<16x128xf32> to vector<16x128xbf16>
    %c0_16 = arith.constant 0 : index
    %c0_17 = arith.constant 0 : index
    %33 = vector.load %arg7[%c0_16, %c0_17] : memref<128x256xbf16, #tpu.memory_space<vmem>>, vector<128x256xbf16>
    %cst_18 = arith.constant dense<0.000000e+00> : vector<16x256xf32>
    %34 = tpu.matmul %32, %33, %cst_18 {dimension_numbers = #tpu.dot_dimension_numbers<[1], [0], [0], [1], [0, 0, 1, 1], [], []>} : vector<16x128xbf16>, vector<128x256xbf16>, vector<16x256xf32> -> vector<16x256xf32>
    %c0_19 = arith.constant 0 : index
    %c0_20 = arith.constant 0 : index
    %35 = vector.load %arg8[%c0_19, %c0_20] : memref<1x256xf32, #tpu.memory_space<vmem>>, vector<1x256xf32>
    %36 = vector.broadcast %35 : vector<1x256xf32> to vector<16x256xf32>
    %37 = arith.addf %34, %36 : vector<16x256xf32>
    %cst_21 = arith.constant 5.000000e-01 : f32
    %38 = vector.broadcast %cst_21 : f32 to vector<16x256xf32>
    %39 = arith.mulf %38, %37 : vector<16x256xf32>
    %cst_22 = arith.constant 4.471500e-02 : f32
    %40 = vector.broadcast %cst_22 : f32 to vector<16x256xf32>
    %41 = arith.mulf %40, %37 : vector<16x256xf32>
    %42 = arith.mulf %41, %37 : vector<16x256xf32>
    %43 = arith.mulf %42, %37 : vector<16x256xf32>
    %44 = arith.addf %37, %43 : vector<16x256xf32>
    %cst_23 = arith.constant 0.797884583 : f32
    %45 = vector.broadcast %cst_23 : f32 to vector<16x256xf32>
    %46 = arith.mulf %45, %44 : vector<16x256xf32>
    %47 = math.tanh %46 : vector<16x256xf32>
    %cst_24 = arith.constant 1.000000e+00 : f32
    %48 = vector.broadcast %cst_24 : f32 to vector<16x256xf32>
    %49 = arith.addf %48, %47 : vector<16x256xf32>
    %50 = arith.mulf %39, %49 : vector<16x256xf32>
    %51 = arith.truncf %50 : vector<16x256xf32> to vector<16x256xbf16>
    %c0_25 = arith.constant 0 : index
    %c0_26 = arith.constant 0 : index
    %52 = vector.load %arg9[%c0_25, %c0_26] : memref<256x128xbf16, #tpu.memory_space<vmem>>, vector<256x128xbf16>
    %cst_27 = arith.constant dense<0.000000e+00> : vector<16x128xf32>
    %53 = tpu.matmul %51, %52, %cst_27 {dimension_numbers = #tpu.dot_dimension_numbers<[1], [0], [0], [1], [0, 0, 1, 1], [], []>} : vector<16x256xbf16>, vector<256x128xbf16>, vector<16x128xf32> -> vector<16x128xf32>
    %c0_28 = arith.constant 0 : index
    %c0_29 = arith.constant 0 : index
    %54 = vector.load %arg10[%c0_28, %c0_29] : memref<1x128xf32, #tpu.memory_space<vmem>>, vector<1x128xf32>
    %55 = vector.broadcast %54 : vector<1x128xf32> to vector<16x128xf32>
    %56 = arith.addf %53, %55 : vector<16x128xf32>
    %57 = arith.addf %31, %56 : vector<16x128xf32>
    %c0_30 = arith.constant 0 : index
    %c0_31 = arith.constant 0 : index
    %58 = vector.load %arg11[%c0_30, %c0_31] : memref<1x128xf32, #tpu.memory_space<vmem>>, vector<1x128xf32>
    %c0_32 = arith.constant 0 : index
    %c0_33 = arith.constant 0 : index
    %59 = vector.load %arg12[%c0_32, %c0_33] : memref<1x128xf32, #tpu.memory_space<vmem>>, vector<1x128xf32>
    %cst_34 = arith.constant dense<0.000000e+00> : vector<16xf32>
    %60 = vector.multi_reduction <add>, %57, %cst_34 [1] : vector<16x128xf32> to vector<16xf32>
    %61 = vector.shape_cast %60 : vector<16xf32> to vector<16x1xf32>
    %cst_35 = arith.constant 1.280000e+02 : f32
    %62 = vector.broadcast %cst_35 : f32 to vector<16x1xf32>
    %63 = arith.divf %61, %62 : vector<16x1xf32>
    %64 = vector.broadcast %63 : vector<16x1xf32> to vector<16x128xf32>
    %65 = arith.subf %57, %64 : vector<16x128xf32>
    %66 = arith.mulf %65, %65 : vector<16x128xf32>
    %cst_36 = arith.constant dense<0.000000e+00> : vector<16xf32>
    %67 = vector.multi_reduction <add>, %66, %cst_36 [1] : vector<16x128xf32> to vector<16xf32>
    %68 = vector.shape_cast %67 : vector<16xf32> to vector<16x1xf32>
    %cst_37 = arith.constant 1.280000e+02 : f32
    %69 = vector.broadcast %cst_37 : f32 to vector<16x1xf32>
    %70 = arith.divf %68, %69 : vector<16x1xf32>
    %71 = vector.broadcast %63 : vector<16x1xf32> to vector<16x128xf32>
    %72 = arith.subf %57, %71 : vector<16x128xf32>
    %cst_38 = arith.constant 9.99999974E-6 : f32
    %73 = vector.broadcast %cst_38 : f32 to vector<16x1xf32>
    %74 = arith.addf %70, %73 : vector<16x1xf32>
    %75 = math.rsqrt %74 : vector<16x1xf32>
    %76 = vector.broadcast %75 : vector<16x1xf32> to vector<16x128xf32>
    %77 = arith.mulf %72, %76 : vector<16x128xf32>
    %78 = vector.broadcast %58 : vector<1x128xf32> to vector<16x128xf32>
    %79 = arith.mulf %77, %78 : vector<16x128xf32>
    %80 = vector.broadcast %59 : vector<1x128xf32> to vector<16x128xf32>
    %81 = arith.addf %79, %80 : vector<16x128xf32>
    %c0_39 = arith.constant 0 : index
    %c0_40 = arith.constant 0 : index
    %82 = vector.load %arg13[%c0_39, %c0_40] : memref<16x128xf32, #tpu.memory_space<vmem>>, vector<16x128xf32>
    tpu.vector_store %arg13[%c0_39, %c0_40], %81 {strides = array<i32>} : memref<16x128xf32, #tpu.memory_space<vmem>>, vector<16x128xf32>,
    return
  }
  func.func @transform_0(%arg0: i32) -> (i32, i32) {
    %c0_i32 = arith.constant 0 : i32
    %c0_i32_0 = arith.constant 0 : i32
    return %arg0, %c0_i32 : i32, i32
  }
  func.func @transform_1(%arg0: i32) -> (i32, i32) {
    %c0_i32 = arith.constant 0 : i32
    %c0_i32_0 = arith.constant 0 : i32
    return %arg0, %c0_i32 : i32, i32
  }
  func.func @transform_2(%arg0: i32) -> (i32, i32) {
    %c0_i32 = arith.constant 0 : i32
    %c0_i32_0 = arith.constant 0 : i32
    %c0_i32_1 = arith.constant 0 : i32
    return %c0_i32, %c0_i32_0 : i32, i32
  }
  func.func @transform_3(%arg0: i32) -> (i32, i32) {
    %c0_i32 = arith.constant 0 : i32
    %c0_i32_0 = arith.constant 0 : i32
    %c0_i32_1 = arith.constant 0 : i32
    return %c0_i32, %c0_i32_0 : i32, i32
  }
  func.func @transform_4(%arg0: i32) -> (i32, i32) {
    %c0_i32 = arith.constant 0 : i32
    %c0_i32_0 = arith.constant 0 : i32
    %c0_i32_1 = arith.constant 0 : i32
    return %c0_i32, %c0_i32_0 : i32, i32
  }
  func.func @transform_5(%arg0: i32) -> (i32, i32) {
    %c0_i32 = arith.constant 0 : i32
    %c0_i32_0 = arith.constant 0 : i32
    %c0_i32_1 = arith.constant 0 : i32
    return %c0_i32, %c0_i32_0 : i32, i32
  }
  func.func @transform_6(%arg0: i32) -> (i32, i32) {
    %c0_i32 = arith.constant 0 : i32
    %c0_i32_0 = arith.constant 0 : i32
    %c0_i32_1 = arith.constant 0 : i32
    return %c0_i32, %c0_i32_0 : i32, i32
  }
  func.func @transform_7(%arg0: i32) -> (i32, i32) {
    %c0_i32 = arith.constant 0 : i32
    %c0_i32_0 = arith.constant 0 : i32
    %c0_i32_1 = arith.constant 0 : i32
    return %c0_i32, %c0_i32_0 : i32, i32
  }
  func.func @transform_8(%arg0: i32) -> (i32, i32) {
    %c0_i32 = arith.constant 0 : i32
    %c0_i32_0 = arith.constant 0 : i32
    %c0_i32_1 = arith.constant 0 : i32
    return %c0_i32, %c0_i32_0 : i32, i32
  }
  func.func @transform_9(%arg0: i32) -> (i32, i32) {
    %c0_i32 = arith.constant 0 : i32
    %c0_i32_0 = arith.constant 0 : i32
    %c0_i32_1 = arith.constant 0 : i32
    return %c0_i32, %c0_i32_0 : i32, i32
  }
  func.func @transform_10(%arg0: i32) -> (i32, i32) {
    %c0_i32 = arith.constant 0 : i32
    %c0_i32_0 = arith.constant 0 : i32
    %c0_i32_1 = arith.constant 0 : i32
    return %c0_i32, %c0_i32_0 : i32, i32
  }
  func.func @transform_11(%arg0: i32) -> (i32, i32) {
    %c0_i32 = arith.constant 0 : i32
    %c0_i32_0 = arith.constant 0 : i32
    %c0_i32_1 = arith.constant 0 : i32
    return %c0_i32, %c0_i32_0 : i32, i32
  }
  func.func @transform_12(%arg0: i32) -> (i32, i32) {
    %c0_i32 = arith.constant 0 : i32
    %c0_i32_0 = arith.constant 0 : i32
    return %arg0, %c0_i32 : i32, i32
  }
}

</mosaic_0001>

<bundles_post_ra>
// kernel: _lambda_.3
= control target key start
LH: loop header
LB: loop body
LE: loop exit
PB: predicated region body
PF: predicated region fallthrough
CT: control target
= control target key end

     0   :  { %11 = vsyncpa [#allocation3], 0  ;;  %s1216_s0 = inlined_call_operand.hbm [shape: f32[32,128], index: 0, kind: input, shape index: {}]   ;;  %s1217_s1 = inlined_call_operand.hbm [shape: bf16[128,384], index: 1, kind: input, shape index: {}]   ;;  %s1218_s2 = inlined_call_operand.vmem [shape: f32[1,384], index: 2, kind: input, shape index: {}]   ;;  %s1219_s3 = inlined_call_operand.vmem [shape: bf16[32,128], index: 3, kind: output, shape index: {0}]   ;;  %s1220_s4 = inlined_call_operand.vmem [shape: bf16[32,128], index: 4, kind: output, shape index: {1}]   ;;  %s1221_s5 = inlined_call_operand.vmem [shape: bf16[32,128], index: 5, kind: output, shape index: {2}]  }
   0x1   :  { %13 = vsyncpa [#allocation3 + $0x1], 0 }
   0x2   :  { %14 = vsyncpa [#allocation5], 0  ;;  %s1055_s18 = smov 0   ;;  %s1057_s19 = smov 0  }
   0x3   :  { %s1059_s20 = smov 0   ;;  %s1061_s21 = smov 0  }
   0x4 LB: > { %s729_s22 = sadd.s32 4294967295, %s1014_s21   ;;  %p40_p0 = scmp.ne.s32.totalorder %s1006_s19, %s1002_s18  ;;  %s1014_s21 = sphi %s1061_s21, %s1237_s21   ;;  %s1010_s20 = sphi %s1059_s20, %s1236_s20   ;;  %s1006_s19 = sphi %s1057_s19, %s1235_s19   ;;  %s1002_s18 = sphi %s1055_s18, %s1234_s18  }
   0x5   : > { %p1077_p1 = scmp.eq.s32.totalorder %s729_s22, 0  ;;  %p731_p2 = scmp.ge.s32.totalorder %s1014_s21, 1 }
   0x6   : > { %p171_p3 = scmp.lt.s32.totalorder %s1014_s21, 3  ;;  %s1016_s26 = smov [#allocation4]  }
   0x7   : > { %s1226_s23 = scalar_select %p1077_p1, 1, 0 }
   0x8   : > { %p1085_p4 = por %p1077_p1, %p40_p0  ;;  %p1089_p5 = pnand %p731_p2, %p171_p3 }
   0x9   : > { %s183_s27 = sshll.u32 %s1016_s26, 4  ;;  %s1102_s29 = sadd.s32 1, %s1014_s21   ;;  %s184_s27 = int_to_ptr.vmem [resolvable:$true] %s183_s27 }
   0xa   : > { %s1227_s24 = scalar_select %p1085_p4, 1, 0 }
   0xb   : > { %s1228_s25 = scalar_select %p1089_p5, 1, 0 }
   0xc   : > { %p835_p6 = pneg %p1089_p5  ;;  %s27_s30 = sadd.s32 1, %s1010_s20 }
   0xd   : > { %s24_s6 = ssub.s32 %s1014_s21, %s1102_s29  ;;  %s918_s9 = scalar_lea.hbm %s1217_s1, 3072 }
   0xe   : > { %p1097_p7 = pnand %p835_p6, %p1077_p1  ;;  %p919_p8 = scmp.ne.s32.totalorder %s1217_s1, %s918_s9 }
   0xf   : > { %p925_p12 = scmp.lt.u32.totalorder %s918_s9, %s1217_s1 }
  0x10   : > { %p920_p9 = pneg %p1097_p7 }
  0x12   : > { %p921_p10 = pnand %p920_p9, %p919_p8 }
  0x14   : > { %p922_p11 = pneg %p921_p10 }
  0x16   : > { %p927_p13 = pnand %p925_p12, %p922_p11 }
  0x18   : > { %930 = shalt.err (!%p927_p13)
}
  0x19   : > { %s931_s14 = scalar_lea.vmem %s184_s27, 3072  ;;  %p939_p6 = scmp.lt.s32.totalorder %s184_s27, %s184_s27 }
  0x1a   : > { %p932_p0 = scmp.ne.s32.totalorder %s184_s27, %s931_s14  ;;  %p940_p1 = scmp.lt.s32.totalorder %s931_s14, %s931_s14 }
  0x1c   : > { %p934_p2 = pnand %p932_p0, %p920_p9  ;;  %p941_p4 = por %p940_p1, %p939_p6 }
  0x1e   : > { %p935_p3 = pneg %p934_p2 }
  0x20   : > { %p942_p5 = pnand %p941_p4, %p935_p3 }
  0x22   : > { %945 = shalt.err (!%p942_p5)
}
  0x23   : > { %s1017_s15 = smov 192   ;;  %s1018_s16 = smov 12  }
  0x24   : > { %838 = dma.hbm_to_vmem [thread:$0]  (!%p1097_p7), %s1217_s1, 3072, %s184_s27, [#allocation5], %s1017_s15, %s1017_s15, %s1018_s16  }
  0x25   : > { %p25_p8 = scmp.eq.s32.totalorder %s24_s6, 0  ;;  %p34_p9 = scmp.ne.s32.totalorder %s1010_s20, %s1006_s19 }
  0x26   : > { %p35_p1 = scmp.eq.s32.totalorder %s1014_s21, 0  ;;  %p844_p4 = scmp.lt.s32.totalorder %s1014_s21, 2 }
  0x27   : > { %s1128_s26 = scalar_select %p25_p8, %s1010_s20, %s27_s30  }
  0x28   : > { %p36_p5 = por %p35_p1, %p34_p9  ;;  %s200_s7 = sand.u32 1, %s1010_s20  }
  0x29   : > { %s734_s8 = sshll.u32 %s200_s7, 4  ;;  %s778_s9 = sshll.u32 %s1014_s21, 8 }
  0x2a   : > { %s1135_s12 = scalar_lea.hbm %s1216_s0, %s778_s9  ;;  %s204_s27 = scalar_lea.vmem [#allocation2], %s734_s8 }
  0x2b   : > { %s211_s28 = sshll.u32 %s204_s27, 4  ;;  %p1139_p7 = pnand %p844_p4, %p36_p5  ;;  %s1137_s28 = int_to_ptr.vmem [resolvable:$true] %s211_s28 }
  0x2c   : > { %s1143_s6 = scalar_lea.sflag [#allocation3], %s200_s7  ;;  %s946_s13 = scalar_lea.hbm %s1135_s12, 256 }
  0x2d   : > { %p947_p10 = scmp.ne.s32.totalorder %s1135_s12, %s946_s13  ;;  %p948_p11 = pneg %p1139_p7 }
  0x2e   : > { %s951_s16 = scalar_lea.hbm %s1216_s0, 512  ;;  %p952_p0 = scmp.lt.u32.totalorder %s1135_s12, %s1216_s0 }
  0x2f   : > { %p949_p12 = pnand %p948_p11, %p947_p10  ;;  %p953_p2 = scmp.lt.u32.totalorder %s951_s16, %s946_s13 }
  0x30   : > { %p955_p6 = scmp.lt.u32.totalorder %s946_s13, %s1135_s12 }
  0x31   : > { %p950_p13 = pneg %p949_p12  ;;  %p954_p3 = por %p953_p2, %p952_p0 }
  0x33   : > { %p956_p8 = por %p955_p6, %p954_p3 }
  0x35   : > { %p957_p9 = pnand %p956_p8, %p950_p13 }
  0x37   : > { %960 = shalt.err (!%p957_p9)
}
  0x38   : > { %s961_s7 = scalar_lea.vmem %s1137_s28, 256  ;;  %s1019_s8 = smov [#allocation2]  }
  0x39   : > { %p962_p1 = scmp.ne.s32.totalorder %s1137_s28, %s961_s7  ;;  %s966_s9 = sshll.u32 %s1019_s8, 4  ;;  %s967_s9 = int_to_ptr.vmem [resolvable:$false] %s966_s9 }
  0x3a   : > { %s968_s10 = scalar_lea.vmem %s967_s9, 512  ;;  %p969_p10 = scmp.lt.s32.totalorder %s1137_s28, %s967_s9 }
  0x3b   : > { %p964_p4 = pnand %p962_p1, %p948_p11  ;;  %p970_p12 = scmp.lt.s32.totalorder %s968_s10, %s961_s7 }
  0x3d   : > { %p965_p5 = pneg %p964_p4  ;;  %p971_p0 = por %p970_p12, %p969_p10 }
  0x3f   : > { %p972_p2 = pnand %p971_p0, %p965_p5 }
  0x41   : > { %975 = shalt.err (!%p972_p2)
}
  0x42   : > { %s1020_s11 = smov 128   ;;  %s1021_s27 = smov 8  }
  0x43   : > { %842 = dma.hbm_to_vmem [thread:$0]  (!%p1139_p7), %s1135_s12, 256, %s1137_s28, %s1143_s6, %s1020_s11, %s1020_s11, %s1021_s27  }
  0x44   : > { %p1231_p11 = scmp.ne.s32.totalorder %s1228_s25, 0 }
  0x45   : > { %s225_s13 = sand.u32 (!%p1231_p11), 1, %s1006_s19   ;;  %p1232_p13 = scmp.ne.s32.totalorder (!%p1231_p11), %s1227_s24, 0 }
  0x46   : > { %223 = sbr.rel (%p1231_p11) target bundleno = 335 (0x14f), region = 32  ;;  %s1174_s14 = sshll.u32 (!%p1231_p11), %s225_s13, 4 }
  0x47   : > { %s226_s15 = scalar_lea.sflag (!%p1231_p11), [#allocation3], %s225_s13  ;;  %s229_s16 = scalar_lea.vmem (!%p1231_p11), [#allocation2], %s1174_s14 }
  0x4d   : > { %993 = dma.done.wait (%p1232_p13), %s226_s15, 256  }
  0x4e   : > { %995 = vsyncadd (%p1232_p13), %s226_s15, 4294967040  ;;  %p1233_p3 = scmp.ne.s32.totalorder %s1226_s23, 0 }
  0x50   : > { %997 = dma.done.wait (%p1233_p3), [#allocation5], 3072  }
  0x51   : > { %999 = vsyncadd (%p1233_p3), [#allocation5], 4294964224  ;;  %v1022_v0 = vmov 0.0   ;;  %vm1023_vm0 = vmmov 0   ;;  %v1024_v1 = vmov 0   ;;  %v290_v25 = vld [vmem:[%s229_s16] sm:$0xff]  ;;  %v327_v29 = vlaneseq }
  0x52   : > { %809 = vmatprep.subr.bf16.mxu1 %v1022_v0  ;;  %825 = vmatprep.mubr.msk.bf16.mxu1 %vm1023_vm0, %v1022_v0  ;;  %v886_v2 = vld [vmem:[#allocation4 + $0x4] ss:$12 sps:$4 sm:$0xff]   ;;  %v888_v3 = vld [vmem:[#allocation4 + $0x8] ss:$12 sps:$4 sm:$0xff]   ;;  %v889_v4 = vld [vmem:[#allocation4] ss:$12 sps:$4 sm:$0xff]  }
  0x53   : > { %502 = vmatprep.mubr.bf16.mxu0 %v1024_v1  ;;  %470 = vmatprep.subr.bf16.mxu0 %v886_v2  ;;  %v890_v5 = vld [vmem:[#allocation4 + $0x1c] ss:$12 sps:$4 sm:$0xff]   ;;  %v892_v6 = vld [vmem:[#allocation4 + $0x20] ss:$12 sps:$4 sm:$0xff]   ;;  %v893_v7 = vld [vmem:[#allocation4 + $0x18] ss:$12 sps:$4 sm:$0xff]  }
  0x54   : > { %810 = vmatpush3.bf16.msra.mxu1 %v888_v3  ;;  %471 = vmatpush1.bf16.msra.mxu0 %v889_v4  ;;  %v894_v8 = vld [vmem:[#allocation4 + $0x34] ss:$12 sps:$4 sm:$0xff]   ;;  %v896_v9 = vld [vmem:[#allocation4 + $0x38] ss:$12 sps:$4 sm:$0xff]   ;;  %v897_v10 = vld [vmem:[#allocation4 + $0x30] ss:$12 sps:$4 sm:$0xff]  }
  0x55   : > { %811 = vmatprep.subr.bf16.mxu1 %v1022_v0  ;;  %472 = vmatprep.subr.bf16.mxu0 %v890_v5  ;;  %v898_v11 = vld [vmem:[#allocation4 + $0x4c] ss:$12 sps:$4 sm:$0xff]   ;;  %v900_v12 = vld [vmem:[#allocation4 + $0x50] ss:$12 sps:$4 sm:$0xff]   ;;  %v901_v13 = vld [vmem:[#allocation4 + $0x48] ss:$12 sps:$4 sm:$0xff]  }
  0x56   : > { %v902_v14 = vld [vmem:[#allocation4 + $0x64] ss:$12 sps:$4 sm:$0xff]   ;;  %v904_v15 = vld [vmem:[#allocation4 + $0x68] ss:$12 sps:$4 sm:$0xff]   ;;  %v905_v16 = vld [vmem:[#allocation4 + $0x60] ss:$12 sps:$4 sm:$0xff]  }
  0x57   : > { %v906_v17 = vld [vmem:[#allocation4 + $0x7c] ss:$12 sps:$4 sm:$0xff]   ;;  %v908_v18 = vld [vmem:[#allocation4 + $0x80] ss:$12 sps:$4 sm:$0xff]   ;;  %v909_v19 = vld [vmem:[#allocation4 + $0x78] ss:$12 sps:$4 sm:$0xff]  }
  0x58   : > { %812 = vmatpush3.bf16.msra.mxu1 %v892_v6  ;;  %473 = vmatpush1.bf16.msra.mxu0 %v893_v7  ;;  %v910_v20 = vld [vmem:[#allocation4 + $0x94] ss:$12 sps:$4 sm:$0xff]   ;;  %v912_v21 = vld [vmem:[#allocation4 + $0x98] ss:$12 sps:$4 sm:$0xff]   ;;  %v913_v22 = vld [vmem:[#allocation4 + $0x90] ss:$12 sps:$4 sm:$0xff]  }
  0x59   : > { %813 = vmatprep.subr.bf16.mxu1 %v1022_v0  ;;  %474 = vmatprep.subr.bf16.mxu0 %v894_v8  ;;  %v914_v23 = vld [vmem:[#allocation4 + $0xac] ss:$12 sps:$4 sm:$0xff]   ;;  %v916_v24 = vld [vmem:[#allocation4 + $0xb0] ss:$12 sps:$4 sm:$0xff]   ;;  %v917_v27 = vld [vmem:[#allocation4 + $0xa8] ss:$12 sps:$4 sm:$0xff]  }
  0x5a   : > { %v291_v26 = vld [vmem:[%s229_s16 + $0x8] sm:$0xff]  ;;  %v328_v30 = vshrl.u32 %v327_v29, 7  ;;  %s740_s23 = sshll.u32 %s729_s22, 1  ;;  %v325_v32 = vld [vmem:[%s1218_s2] sm:$0x7] }
  0x5b   : > { %v292_v28 = vpack.c.bf16 %v291_v26, %v290_v25  ;;  %p272_p7 = scmp.lt.s32.totalorder %s740_s23, 3 }
  0x5c   : > { %814 = vmatpush3.bf16.msra.mxu1 %v896_v9  ;;  %475 = vmatpush1.bf16.msra.mxu0 %v897_v10  ;;  %v337_v31 = vsub.s32 2, %v328_v30  ;;  %v329_v33 = vsub.s32 0, %v328_v30  ;;  %v333_v35 = vsub.s32 1, %v328_v30 }
  0x5d   : > { %815 = vmatprep.subr.bf16.mxu1 %v1022_v0  ;;  %476 = vmatprep.subr.bf16.mxu0 %v898_v11  ;;  %s1239_s23 = smov (!%p272_p7, %s740_s23), 3 }
  0x5e   : > { %v338_v34 = vrot.slane %v325_v32, %v337_v31  ;;  %v330_v37 = vrot.slane %v325_v32, %v329_v33  ;;  %v334_v41 = vrot.slane %v325_v32, %v333_v35  ;;  %s741_s12 = sshll.u32 %s1239_s23, 2 }
  0x5f   : > { %s287_s28 = scalar_lea.vmem %s1221_s5, %s741_s12  ;;  %s275_s17 = scalar_lea.vmem %s1219_s3, %s741_s12 }
  0x60   : > { %816 = vmatpush3.bf16.msra.mxu1 %v900_v12  ;;  %477 = vmatpush1.bf16.msra.mxu0 %v901_v13  ;;  %s281_s8 = scalar_lea.vmem %s1220_s4, %s741_s12 }
  0x61   : > { %817 = vmatprep.subr.bf16.mxu1 %v1022_v0  ;;  %478 = vmatprep.subr.bf16.mxu0 %v902_v14 }
  0x64   : > { %818 = vmatpush3.bf16.msra.mxu1 %v904_v15  ;;  %479 = vmatpush1.bf16.msra.mxu0 %v905_v16 }
  0x65   : > { %819 = vmatprep.subr.bf16.mxu1 %v1022_v0  ;;  %480 = vmatprep.subr.bf16.mxu0 %v906_v17 }
  0x68   : > { %820 = vmatpush3.bf16.msra.mxu1 %v908_v18  ;;  %481 = vmatpush1.bf16.msra.mxu0 %v909_v19 }
  0x69   : > { %821 = vmatprep.subr.bf16.mxu1 %v1022_v0  ;;  %482 = vmatprep.subr.bf16.mxu0 %v910_v20 }
  0x6c   : > { %822 = vmatpush3.bf16.msra.mxu1 %v912_v21  ;;  %483 = vmatpush1.bf16.msra.mxu0 %v913_v22 }
  0x6d   : > { %823 = vmatprep.subr.bf16.mxu1 %v1022_v0  ;;  %484 = vmatprep.subr.bf16.mxu0 %v914_v23 }
  0x70   : > { %824 = vmatpush3.bf16.msra.mxu1 %v916_v24  ;;  %485 = vmatpush1.bf16.msra.mxu0 %v917_v27 }
  0x73   : > { %826 = vmatmul.mubr.bf16.vlgmr.msra.gmra.mrb[0].mxu1 %v292_v28  ;;  %503 = vmatmul.mubr.bf16.vlgmr.msra.gmra.mrb[0].mxu0 %v292_v28 }
 0x146   : > { %v547_v36 = vpop.f32.mrb[0].mxu1  ;;  %v504_v39 = vpop.f32.mrb[0].mxu0 }
 0x147   : > { %v548_v38 = vadd.f32 %v547_v36, %v338_v34  ;;  %v827_v40 = vpop.f32.mrb[1].mxu1  ;;  %v506_v42 = vpop.f32.mrb[1].mxu0  ;;  %v505_v47 = vadd.f32 %v504_v39, %v330_v37 }
 0x148   : > { %v550_v43 = vpop.f32.mrb[2].mxu1  ;;  %v508_v45 = vpop.f32.mrb[2].mxu0  ;;  %v507_v50 = vadd.f32 %v506_v42, %v334_v41 }
 0x149   : > { %v551_v44 = vadd.f32 %v550_v43, %v338_v34  ;;  %v828_v46 = vpop.f32.mrb[3].mxu1  ;;  %v509_v48 = vadd.f32 %v508_v45, %v330_v37  ;;  %v510_v49 = vpop.f32.mrb[3].mxu0 }
 0x14a   : > { %v511_v52 = vadd.f32 %v510_v49, %v334_v41 }
 0x14b   : > { %v798_v51 = vpack.c.bf16 %v551_v44, %v548_v38  ;;  %v788_v53 = vpack.c.bf16 %v509_v48, %v505_v47 }
 0x14c   : > { %v793_v54 = vpack.c.bf16 %v511_v52, %v507_v50 }
 0x14d   : > { %799 = vst [vmem:[%s287_s28] sm:$0xff] %v798_v51   ;;  %789 = vst [vmem:[%s275_s17] sm:$0xff] %v788_v53  }
 0x14e   : > { %794 = vst [vmem:[%s281_s8] sm:$0xff] %v793_v54  }
 0x14f PF: > { %p17_p6 = scmp.ge.s32.totalorder %s1102_s29, 4   ;;  %s1234_s18 = smov %s1006_s19 }
 0x150   : > { %s1235_s19 = smov %s1010_s20  ;;  %s1236_s20 = smov %s1128_s26 }
 0x151   : > { %s1237_s21 = smov %s1102_s29  ;;  %19 = sbr.rel (!%p17_p6) target bundleno = 4 (0x4), region = 100 }
 0x158   :  { %640 = vsyncpa [#allocation3], 1 }
 0x159   :  { %642 = vsyncpa [#allocation3 + $0x1], 1 }
 0x15a   :  { %643 = vsyncpa [#allocation5], 1 }

// kernel: _lambda_.4
= control target key start
LH: loop header
LB: loop body
LE: loop exit
PB: predicated region body
PF: predicated region fallthrough
CT: control target
= control target key end

     0   :  { %s1406_s12 = smov 0   ;;  %s1601_s0 = inlined_call_operand.vmem [shape: bf16[16,8,32], index: 0, kind: input, shape index: {}]   ;;  %s1602_s1 = inlined_call_operand.vmem [shape: bf16[16,8,32], index: 1, kind: input, shape index: {}]   ;;  %s1603_s2 = inlined_call_operand.vmem [shape: bf16[16,8,32], index: 2, kind: input, shape index: {}]   ;;  %s1604_s3 = inlined_call_operand.vmem [shape: bf16[16,8,32], index: 3, kind: output, shape index: {}]  }
   0x1 LB: > { %s1175_s13 = sadd.s32 4294967295, %s1382_s12   ;;  %p1179_p0 = scmp.ge.s32.totalorder %s1382_s12, 1  ;;  %s1382_s12 = sphi %s1406_s12, %s13_s12  }
   0x2   : > { %p160_p1 = scmp.lt.s32.totalorder %s1382_s12, 3 }
   0x4   : > { %p161_p2 = pnand %p1179_p0, %p160_p1 }
   0x5   : > { %s1180_s14 = sshll.u32 (!%p161_p2), %s1175_s13, 3  ;;  %v1384_v0 = vmov (!%p161_p2), 0.0   ;;  %vm1385_vm0 = vmmov (!%p161_p2), 0   ;;  %vm243_vm1 = vcmask (!%p161_p2), 261120   ;;  %vm612_vm2 = vcmask (!%p161_p2), 64512  }
   0x6   : > { %164 = sbr.rel (%p161_p2) target bundleno = 796 (0x31c), region = 32  ;;  %1238 = vmatprep.subr.bf16.mxu0 (!%p161_p2), %v1384_v0  ;;  %1244 = vmatprep.subr.bf16.mxu1 (!%p161_p2), %v1384_v0  ;;  %p195_p3 = scmp.lt.s32.totalorder (!%p161_p2), %s1180_s14, 15  ;;  %vm712_vm3 = vcmask (!%p161_p2), 1043456   ;;  %vm1086_vm4 = vcmask (!%p161_p2), 257024  }
   0x7   : > { %1240 = vmatprep.mubr.msk.bf16.mxu0 (!%p161_p2), %vm1385_vm0, %v1384_v0  ;;  %1246 = vmatprep.mubr.msk.bf16.mxu1 (!%p161_p2), %vm1385_vm0, %v1384_v0 }
   0xd   : > { %s1606_s14 = smov (!%p195_p3, %s1180_s14), 15 }
   0xe   : > { %s1420_s15 = sshll.u32 %s1606_s14, 2 }
   0xf   : > { %s1426_s18 = scalar_lea.vmem %s1602_s1, %s1420_s15  ;;  %s1436_s21 = scalar_lea.vmem %s1601_s0, %s1420_s15 }
  0x10   : > { %v227_v1 = vld [vmem:[%s1426_s18] sm:$0xf]  ;;  %v228_v2 = vld [vmem:[%s1426_s18 + $0x4] sm:$0xf]  ;;  %v229_v5 = vld [vmem:[%s1426_s18 + $0x8] sm:$0xf]  ;;  %s210_s24 = scalar_lea.vmem %s1603_s2, %s1420_s15  ;;  %s1580_s27 = scalar_lea.vmem %s1604_s3, %s1420_s15 }
  0x11   : > { %v248_v3 = vsel %vm243_vm1, %v227_v1, 0  ;;  %v294_v4 = vsel %vm243_vm1, %v228_v2, 0  ;;  %v230_v6 = vld [vmem:[%s1426_s18 + $0xc] sm:$0xf]  ;;  %v219_v7 = vld [vmem:[%s1436_s21] sm:$0xf] }
  0x12   : > { %1239 = vmatpush3.bf16.xpose.msra.mxu0 %v248_v3  ;;  %1245 = vmatpush3.bf16.xpose.msra.mxu1 %v294_v4  ;;  %v220_v8 = vld [vmem:[%s1436_s21 + $0x4] sm:$0xf]  ;;  %v340_v9 = vsel %vm243_vm1, %v229_v5, 0  ;;  %v386_v10 = vsel %vm243_vm1, %v230_v6, 0  ;;  %v231_v11 = vld [vmem:[%s1426_s18 + $0x10] sm:$0xf] }
  0x13   : > { %1250 = vmatprep.subr.bf16.mxu0 %v1384_v0  ;;  %1256 = vmatprep.subr.bf16.mxu1 %v1384_v0  ;;  %v232_v12 = vld [vmem:[%s1426_s18 + $0x14] sm:$0xf]  ;;  %v221_v13 = vld [vmem:[%s1436_s21 + $0x8] sm:$0xf]  ;;  %v222_v14 = vld [vmem:[%s1436_s21 + $0xc] sm:$0xf] }
  0x14   : > { %v432_v15 = vsel %vm243_vm1, %v231_v11, 0  ;;  %v478_v16 = vsel %vm243_vm1, %v232_v12, 0  ;;  %v233_v17 = vld [vmem:[%s1426_s18 + $0x18] sm:$0xf]  ;;  %v234_v18 = vld [vmem:[%s1426_s18 + $0x1c] sm:$0xf] }
  0x15   : > { %v223_v19 = vld [vmem:[%s1436_s21 + $0x10] sm:$0xf]  ;;  %v224_v20 = vld [vmem:[%s1436_s21 + $0x14] sm:$0xf]  ;;  %v524_v21 = vsel %vm243_vm1, %v233_v17, 0  ;;  %v570_v22 = vsel %vm243_vm1, %v234_v18, 0 }
  0x16   : > { %v225_v23 = vld [vmem:[%s1436_s21 + $0x18] sm:$0xf]  ;;  %v226_v24 = vld [vmem:[%s1436_s21 + $0x1c] sm:$0xf] }
  0x19   : > { %1241 = vmatmul.mubr.msk.bf16.vlgmr.msra.gmra.mrb[0].mxu0 %vm243_vm1, %v219_v7  ;;  %1247 = vmatmul.mubr.msk.bf16.vlgmr.msra.gmra.mrb[0].mxu1 %vm243_vm1, %v220_v8 }
  0x1a   : > { %1251 = vmatpush3.bf16.xpose.msra.mxu0 %v340_v9  ;;  %1257 = vmatpush3.bf16.xpose.msra.mxu1 %v386_v10 }
  0x1b   : > { %1252 = vmatprep.mubr.msk.bf16.mxu0 %vm1385_vm0, %v1384_v0  ;;  %1258 = vmatprep.mubr.msk.bf16.mxu1 %vm1385_vm0, %v1384_v0 }
  0x1c   : > { %1262 = vmatprep.subr.bf16.mxu0 %v1384_v0  ;;  %1268 = vmatprep.subr.bf16.mxu1 %v1384_v0 }
  0x21   : > { %1253 = vmatmul.mubr.msk.bf16.vlgmr.msra.gmra.mrb[4].mxu0 %vm243_vm1, %v221_v13  ;;  %1259 = vmatmul.mubr.msk.bf16.vlgmr.msra.gmra.mrb[4].mxu1 %vm243_vm1, %v222_v14 }
  0x22   : > { %1263 = vmatpush3.bf16.xpose.msra.mxu0 %v432_v15  ;;  %1269 = vmatpush3.bf16.xpose.msra.mxu1 %v478_v16 }
  0x23   : > { %1264 = vmatprep.mubr.msk.bf16.mxu0 %vm1385_vm0, %v1384_v0  ;;  %1270 = vmatprep.mubr.msk.bf16.mxu1 %vm1385_vm0, %v1384_v0 }
  0x24   : > { %1274 = vmatprep.subr.bf16.mxu0 %v1384_v0  ;;  %1280 = vmatprep.subr.bf16.mxu1 %v1384_v0 }
  0x29   : > { %1265 = vmatmul.mubr.msk.bf16.vlgmr.msra.gmra.mrb[8].mxu0 %vm243_vm1, %v223_v19  ;;  %1271 = vmatmul.mubr.msk.bf16.vlgmr.msra.gmra.mrb[8].mxu1 %vm243_vm1, %v224_v20 }
  0x2a   : > { %1275 = vmatpush3.bf16.xpose.msra.mxu0 %v524_v21  ;;  %1281 = vmatpush3.bf16.xpose.msra.mxu1 %v570_v22 }
  0x2b   : > { %1276 = vmatprep.mubr.msk.bf16.mxu0 %vm1385_vm0, %v1384_v0  ;;  %1282 = vmatprep.mubr.msk.bf16.mxu1 %vm1385_vm0, %v1384_v0 }
  0x2c   : > { %1286 = vmatprep.subr.bf16.mxu0 %v1384_v0  ;;  %1292 = vmatprep.subr.bf16.mxu1 %v1384_v0 }
  0x31   : > { %1277 = vmatmul.mubr.msk.bf16.vlgmr.msra.gmra.mrb[12].mxu0 %vm243_vm1, %v225_v23  ;;  %1283 = vmatmul.mubr.msk.bf16.vlgmr.msra.gmra.mrb[12].mxu1 %vm243_vm1, %v226_v24 }
  0x32   : > { %1288 = vmatprep.mubr.msk.bf16.mxu0 %vm1385_vm0, %v1384_v0  ;;  %1294 = vmatprep.mubr.msk.bf16.mxu1 %vm1385_vm0, %v1384_v0 }
  0xec   : > { %v284_v25 = vpop.f32.mrb[0].mxu0  ;;  %v330_v26 = vpop.f32.mrb[0].mxu1 }
  0xed   : > { %v1242_v27 = vpop.f32.mrb[1].mxu0  ;;  %v613_v28 = vsel %vm612_vm2, %v284_v25, -inf  ;;  %v1248_v29 = vpop.f32.mrb[1].mxu1  ;;  %v616_v34 = vsel %vm612_vm2, %v330_v26, -inf }
  0xee   : > { %614 = vmax.xlane.f32.xlu0 %v613_v28  ;;  %v287_v30 = vpop.f32.mrb[2].mxu0  ;;  %v333_v31 = vpop.f32.mrb[2].mxu1 }
  0xef   : > { %v1243_v32 = vpop.f32.mrb[3].mxu0  ;;  %v1249_v33 = vpop.f32.mrb[3].mxu1 }
  0xf2   : > { %617 = vmax.xlane.f32.xlu0 %v616_v34 }
  0xf4   : > { %v376_v35 = vpop.f32.mrb[4].mxu0  ;;  %v422_v36 = vpop.f32.mrb[4].mxu1 }
  0xf5   : > { %v1254_v37 = vpop.f32.mrb[5].mxu0  ;;  %v619_v38 = vsel %vm612_vm2, %v376_v35, -inf  ;;  %v1260_v39 = vpop.f32.mrb[5].mxu1  ;;  %v622_v44 = vsel %vm612_vm2, %v422_v36, -inf }
  0xf6   : > { %620 = vmax.xlane.f32.xlu1 %v619_v38  ;;  %v379_v40 = vpop.f32.mrb[6].mxu0  ;;  %v425_v41 = vpop.f32.mrb[6].mxu1 }
  0xf7   : > { %v1255_v42 = vpop.f32.mrb[7].mxu0  ;;  %v1261_v43 = vpop.f32.mrb[7].mxu1 }
  0xf8   : > { %v235_v42 = vld [vmem:[%s210_s24] sm:$0xf] }
  0xf9   : > { %v714_v43 = vsel %vm712_vm3, %v235_v42, 0 }
  0xfa   : > { %623 = vmax.xlane.f32.xlu1 %v622_v44  ;;  %1287 = vmatpush3.bf16.msra.mxu0 %v714_v43  ;;  %v236_v44 = vld [vmem:[%s210_s24 + $0x4] sm:$0xf] }
  0xfb   : > { %1298 = vmatprep.subr.bf16.mxu0 %v1384_v0 }
  0xfc   : > { %v468_v45 = vpop.f32.mrb[8].mxu0  ;;  %v514_v46 = vpop.f32.mrb[8].mxu1 }
  0xfd   : > { %v628_v47 = vsel %vm612_vm2, %v514_v46, -inf  ;;  %v625_v48 = vsel %vm612_vm2, %v468_v45, -inf  ;;  %v1266_v49 = vpop.f32.mrb[9].mxu0  ;;  %v1272_v50 = vpop.f32.mrb[9].mxu1 }
  0xfe   : > { %629 = vmax.xlane.f32.xlu1 %v628_v47  ;;  %626 = vmax.xlane.f32.xlu0 %v625_v48  ;;  %v471_v51 = vpop.f32.mrb[10].mxu0  ;;  %v517_v52 = vpop.f32.mrb[10].mxu1  ;;  %v238_v48 = vld [vmem:[%s210_s24 + $0xc] sm:$0xf]  ;;  %v239_v50 = vld [vmem:[%s210_s24 + $0x10] sm:$0xf] }
  0xff   : > { %v1267_v53 = vpop.f32.mrb[11].mxu0  ;;  %v1273_v54 = vpop.f32.mrb[11].mxu1  ;;  %v852_v49 = vsel %vm712_vm3, %v238_v48, 0  ;;  %v898_v51 = vsel %vm712_vm3, %v239_v50, 0  ;;  %v240_v52 = vld [vmem:[%s210_s24 + $0x14] sm:$0xf] }
 0x100   : > { %v944_v53 = vsel %vm712_vm3, %v240_v52, 0  ;;  %v241_v54 = vld [vmem:[%s210_s24 + $0x18] sm:$0xf] }
 0x104   : > { %v560_v55 = vpop.f32.mrb[12].mxu0  ;;  %v606_v56 = vpop.f32.mrb[12].mxu1 }
 0x105   : > { %v634_v57 = vsel %vm612_vm2, %v606_v56, -inf  ;;  %v631_v58 = vsel %vm612_vm2, %v560_v55, -inf  ;;  %v1278_v59 = vpop.f32.mrb[13].mxu0  ;;  %v1284_v60 = vpop.f32.mrb[13].mxu1 }
 0x106   : > { %635 = vmax.xlane.f32.xlu1 %v634_v57  ;;  %632 = vmax.xlane.f32.xlu0 %v631_v58  ;;  %v563_v61 = vpop.f32.mrb[14].mxu0  ;;  %v609_v62 = vpop.f32.mrb[14].mxu1 }
 0x107   : > { %v1279_v63 = vpop.f32.mrb[15].mxu0  ;;  %v1285_v1 = vpop.f32.mrb[15].mxu1 }
 0x17b   : > { %v615_v2 = vpop.xlane.xlu0 %614 }
 0x17c   : > { %v637_v3 = vsub.f32 %v284_v25, %v615_v2 }
 0x17e   : > { %v645_v4 = vmul.f32 1.442695, %v637_v3 }
 0x17f   : > { %v618_v5 = vpop.xlane.xlu0 %617 }
 0x180   : > { %1344 = vpow2.f32 %v645_v4  ;;  %v638_v6 = vsub.f32 %v330_v26, %v618_v5 }
 0x182   : > { %v647_v7 = vmul.f32 1.442695, %v638_v6 }
 0x183   : > { %v621_v8 = vpop.xlane.xlu1 %620 }
 0x184   : > { %1346 = vpow2.f32 %v647_v7  ;;  %v639_v9 = vsub.f32 %v376_v35, %v621_v8 }
 0x186   : > { %v649_v10 = vmul.f32 1.442695, %v639_v9 }
 0x187   : > { %v624_v11 = vpop.xlane.xlu1 %623 }
 0x188   : > { %1348 = vpow2.f32 %v649_v10  ;;  %v640_v12 = vsub.f32 %v422_v36, %v624_v11 }
 0x18a   : > { %v1498_v13 = vpop.eup %1344  ;;  %v651_v14 = vmul.f32 1.442695, %v640_v12 }
 0x18b   : > { %v630_v15 = vpop.xlane.xlu1 %629  ;;  %v627_v16 = vpop.xlane.xlu0 %626  ;;  %v661_v17 = vsel %vm612_vm2, %v1498_v13, 0.0 }
 0x18c   : > { %1350 = vpow2.f32 %v651_v14  ;;  %v642_v18 = vsub.f32 %v514_v46, %v630_v15  ;;  %v641_v19 = vsub.f32 %v468_v45, %v627_v16  ;;  %662 = vadd.xlane.f32.xlu0 %v661_v17  ;;  %v760_v45 = vsel %vm712_vm3, %v236_v44, 0  ;;  %v237_v46 = vld [vmem:[%s210_s24 + $0x8] sm:$0xf] }
 0x18d   : > { %1293 = vmatpush3.bf16.msra.mxu1 %v760_v45  ;;  %v806_v47 = vsel %vm712_vm3, %v237_v46, 0 }
 0x18e   : > { %v1502_v20 = vpop.eup %1346  ;;  %v655_v21 = vmul.f32 1.442695, %v642_v18  ;;  %v653_v22 = vmul.f32 1.442695, %v641_v19  ;;  %1304 = vmatprep.subr.bf16.mxu1 %v1384_v0 }
 0x18f   : > { %v664_v23 = vsel %vm612_vm2, %v1502_v20, 0.0 }
 0x190   : > { %1352 = vpow2.f32 %v655_v21  ;;  %665 = vadd.xlane.f32.xlu1 %v664_v23 }
 0x191   : > { %1354 = vpow2.f32 %v653_v22 }
 0x192   : > { %v1506_v24 = vpop.eup %1348 }
 0x193   : > { %v636_v25 = vpop.xlane.xlu1 %635  ;;  %v633_v26 = vpop.xlane.xlu0 %632  ;;  %v667_v27 = vsel %vm612_vm2, %v1506_v24, 0.0 }
 0x194   : > { %v644_v28 = vsub.f32 %v606_v56, %v636_v25  ;;  %v643_v29 = vsub.f32 %v560_v55, %v633_v26  ;;  %668 = vadd.xlane.f32.xlu0 %v667_v27  ;;  %v990_v55 = vsel %vm712_vm3, %v241_v54, 0  ;;  %v242_v56 = vld [vmem:[%s210_s24 + $0x1c] sm:$0xf] }
 0x195   : > { %v1036_v57 = vsel %vm712_vm3, %v242_v56, 0 }
 0x196   : > { %v1510_v30 = vpop.eup %1350  ;;  %v659_v31 = vmul.f32 1.442695, %v644_v28  ;;  %v657_v32 = vmul.f32 1.442695, %v643_v29 }
 0x197   : > { %v670_v33 = vsel %vm612_vm2, %v1510_v30, 0.0 }
 0x198   : > { %1356 = vpow2.f32 %v659_v31  ;;  %671 = vadd.xlane.f32.xlu1 %v670_v33 }
 0x199   : > { %1358 = vpow2.f32 %v657_v32 }
 0x19a   : > { %v1514_v34 = vpop.eup %1352 }
 0x19b   : > { %v1516_v35 = vpop.eup %1354  ;;  %v676_v36 = vsel %vm612_vm2, %v1514_v34, 0.0 }
 0x19c   : > { %677 = vadd.xlane.f32.xlu1 %v676_v36  ;;  %v673_v37 = vsel %vm612_vm2, %v1516_v35, 0.0 }
 0x19d   : > { %674 = vadd.xlane.f32.xlu0 %v673_v37 }
 0x1a2   : > { %v1522_v38 = vpop.eup %1356 }
 0x1a3   : > { %v1524_v39 = vpop.eup %1358  ;;  %v682_v40 = vsel %vm612_vm2, %v1522_v38, 0.0 }
 0x1a4   : > { %683 = vadd.xlane.f32.xlu1 %v682_v40  ;;  %v679_v41 = vsel %vm612_vm2, %v1524_v39, 0.0 }
 0x1a5   : > { %680 = vadd.xlane.f32.xlu0 %v679_v41 }
 0x219   : > { %v663_v58 = vpop.xlane.xlu0 %662 }
 0x21a   : > { %1360 = vrcp.f32 %v663_v58 }
 0x21d   : > { %v666_v59 = vpop.xlane.xlu1 %665 }
 0x21e   : > { %1362 = vrcp.f32 %v666_v59 }
 0x221   : > { %v669_v60 = vpop.xlane.xlu0 %668 }
 0x222   : > { %1364 = vrcp.f32 %v669_v60 }
 0x224   : > { %v1361_v61 = vpop.eup %1360 }
 0x225   : > { %v693_v62 = vmul.f32 %v1361_v61, %v1498_v13  ;;  %v672_v63 = vpop.xlane.xlu1 %671 }
 0x226   : > { %1366 = vrcp.f32 %v672_v63 }
 0x227   : > { %v701_v1 = vpack.c.bf16 %v693_v62, %v693_v62 }
 0x228   : > { %v1363_v2 = vpop.eup %1362 }
 0x229   : > { %v694_v3 = vmul.f32 %v1363_v2, %v1502_v20  ;;  %v678_v4 = vpop.xlane.xlu1 %677  ;;  %1289 = vmatmul.mubr.msk.bf16.vlgmr.msra.gmra.mrb[16].mxu0 %vm612_vm2, %v701_v1 }
 0x22a   : > { %1368 = vrcp.f32 %v678_v4  ;;  %v675_v5 = vpop.xlane.xlu0 %674  ;;  %1299 = vmatpush3.bf16.msra.mxu0 %v806_v47  ;;  %1300 = vmatprep.mubr.msk.bf16.mxu0 %vm1385_vm0, %v1384_v0 }
 0x22b   : > { %1370 = vrcp.f32 %v675_v5  ;;  %v702_v6 = vpack.c.bf16 %v694_v3, %v694_v3  ;;  %1310 = vmatprep.subr.bf16.mxu0 %v1384_v0 }
 0x22c   : > { %v1365_v7 = vpop.eup %1364 }
 0x22d   : > { %v695_v8 = vmul.f32 %v1365_v7, %v1506_v24  ;;  %1295 = vmatmul.mubr.msk.bf16.vlgmr.msra.gmra.mrb[16].mxu1 %vm612_vm2, %v702_v6 }
 0x22e   : > { %1305 = vmatpush3.bf16.msra.mxu1 %v852_v49  ;;  %1306 = vmatprep.mubr.msk.bf16.mxu1 %vm1385_vm0, %v1384_v0 }
 0x22f   : > { %v703_v9 = vpack.c.bf16 %v695_v8, %v695_v8  ;;  %1316 = vmatprep.subr.bf16.mxu1 %v1384_v0 }
 0x230   : > { %v1367_v10 = vpop.eup %1366 }
 0x231   : > { %v696_v11 = vmul.f32 %v1367_v10, %v1510_v30  ;;  %v684_v12 = vpop.xlane.xlu1 %683  ;;  %1301 = vmatmul.mubr.msk.bf16.vlgmr.msra.gmra.mrb[20].mxu0 %vm612_vm2, %v703_v9 }
 0x232   : > { %1372 = vrcp.f32 %v684_v12  ;;  %v681_v13 = vpop.xlane.xlu0 %680  ;;  %1311 = vmatpush3.bf16.msra.mxu0 %v898_v51  ;;  %1312 = vmatprep.mubr.msk.bf16.mxu0 %vm1385_vm0, %v1384_v0 }
 0x233   : > { %1374 = vrcp.f32 %v681_v13  ;;  %v704_v14 = vpack.c.bf16 %v696_v11, %v696_v11  ;;  %1322 = vmatprep.subr.bf16.mxu0 %v1384_v0 }
 0x234   : > { %v1369_v15 = vpop.eup %1368 }
 0x235   : > { %v1371_v16 = vpop.eup %1370  ;;  %1307 = vmatmul.mubr.msk.bf16.vlgmr.msra.gmra.mrb[20].mxu1 %vm612_vm2, %v704_v14  ;;  %v698_v18 = vmul.f32 %v1369_v15, %v1514_v34 }
 0x236   : > { %v697_v17 = vmul.f32 %v1371_v16, %v1516_v35  ;;  %1317 = vmatpush3.bf16.msra.mxu1 %v944_v53  ;;  %1318 = vmatprep.mubr.msk.bf16.mxu1 %vm1385_vm0, %v1384_v0 }
 0x237   : > { %1328 = vmatprep.subr.bf16.mxu1 %v1384_v0  ;;  %v706_v20 = vpack.c.bf16 %v698_v18, %v698_v18 }
 0x238   : > { %v705_v19 = vpack.c.bf16 %v697_v17, %v697_v17 }
 0x23a   : > { %1313 = vmatmul.mubr.msk.bf16.vlgmr.msra.gmra.mrb[24].mxu0 %vm612_vm2, %v705_v19 }
 0x23b   : > { %1323 = vmatpush3.bf16.msra.mxu0 %v990_v55  ;;  %1324 = vmatprep.mubr.msk.bf16.mxu0 %vm1385_vm0, %v1384_v0 }
 0x23c   : > { %v1373_v21 = vpop.eup %1372 }
 0x23d   : > { %v1375_v22 = vpop.eup %1374  ;;  %1319 = vmatmul.mubr.msk.bf16.vlgmr.msra.gmra.mrb[24].mxu1 %vm612_vm2, %v706_v20  ;;  %v700_v24 = vmul.f32 %v1373_v21, %v1522_v38 }
 0x23e   : > { %v699_v23 = vmul.f32 %v1375_v22, %v1524_v39  ;;  %1329 = vmatpush3.bf16.msra.mxu1 %v1036_v57  ;;  %1330 = vmatprep.mubr.msk.bf16.mxu1 %vm1385_vm0, %v1384_v0 }
 0x23f   : > { %v708_v26 = vpack.c.bf16 %v700_v24, %v700_v24 }
 0x240   : > { %v707_v25 = vpack.c.bf16 %v699_v23, %v699_v23 }
 0x242   : > { %1325 = vmatmul.mubr.msk.bf16.vlgmr.msra.gmra.mrb[28].mxu0 %vm612_vm2, %v707_v25 }
 0x245   : > { %1331 = vmatmul.mubr.msk.bf16.vlgmr.msra.gmra.mrb[28].mxu1 %vm612_vm2, %v708_v26 }
 0x2fc   : > { %v750_v27 = vpop.f32.mrb[16].mxu0 }
 0x2fd   : > { %v1078_v28 = vpack.c.bf16 %v750_v27, %v750_v27  ;;  %v1290_v0 = vpop.f32.mrb[17].mxu0 }
 0x2fe   : > { %v753_v29 = vpop.f32.mrb[18].mxu0 }
 0x2ff   : > { %1087 = vst.msk [vmem:[%s1580_s27] sm:$0xf] %vm1086_vm4, %v1078_v28  ;;  %v1291_v30 = vpop.f32.mrb[19].mxu0 }
 0x300   : > { %v796_v31 = vpop.f32.mrb[16].mxu1 }
 0x301   : > { %v1079_v32 = vpack.c.bf16 %v796_v31, %v796_v31  ;;  %v1296_v33 = vpop.f32.mrb[17].mxu1 }
 0x302   : > { %v799_v34 = vpop.f32.mrb[18].mxu1 }
 0x303   : > { %1088 = vst.msk [vmem:[%s1580_s27 + $0x4] sm:$0xf] %vm1086_vm4, %v1079_v32  ;;  %v1297_v35 = vpop.f32.mrb[19].mxu1 }
 0x304   : > { %v842_v36 = vpop.f32.mrb[20].mxu0 }
 0x305   : > { %v1080_v37 = vpack.c.bf16 %v842_v36, %v842_v36  ;;  %v1302_v38 = vpop.f32.mrb[21].mxu0 }
 0x306   : > { %v845_v39 = vpop.f32.mrb[22].mxu0 }
 0x307   : > { %1089 = vst.msk [vmem:[%s1580_s27 + $0x8] sm:$0xf] %vm1086_vm4, %v1080_v37  ;;  %v1303_v40 = vpop.f32.mrb[23].mxu0 }
 0x308   : > { %v888_v41 = vpop.f32.mrb[20].mxu1 }
 0x309   : > { %v1081_v42 = vpack.c.bf16 %v888_v41, %v888_v41  ;;  %v1308_v43 = vpop.f32.mrb[21].mxu1 }
 0x30a   : > { %v891_v44 = vpop.f32.mrb[22].mxu1 }
 0x30b   : > { %1090 = vst.msk [vmem:[%s1580_s27 + $0xc] sm:$0xf] %vm1086_vm4, %v1081_v42  ;;  %v1309_v45 = vpop.f32.mrb[23].mxu1 }
 0x30d   : > { %v934_v46 = vpop.f32.mrb[24].mxu0 }
 0x30e   : > { %v1082_v47 = vpack.c.bf16 %v934_v46, %v934_v46  ;;  %v1314_v48 = vpop.f32.mrb[25].mxu0 }
 0x30f   : > { %v937_v49 = vpop.f32.mrb[26].mxu0 }
 0x310   : > { %1091 = vst.msk [vmem:[%s1580_s27 + $0x10] sm:$0xf] %vm1086_vm4, %v1082_v47  ;;  %v1315_v50 = vpop.f32.mrb[27].mxu0  ;;  %v980_v51 = vpop.f32.mrb[24].mxu1 }
 0x311   : > { %v1083_v52 = vpack.c.bf16 %v980_v51, %v980_v51  ;;  %v1320_v53 = vpop.f32.mrb[25].mxu1 }
 0x312   : > { %v983_v54 = vpop.f32.mrb[26].mxu1 }
 0x313   : > { %1092 = vst.msk [vmem:[%s1580_s27 + $0x14] sm:$0xf] %vm1086_vm4, %v1083_v52  ;;  %v1321_v55 = vpop.f32.mrb[27].mxu1 }
 0x315   : > { %v1026_v56 = vpop.f32.mrb[28].mxu0 }
 0x316   : > { %v1084_v57 = vpack.c.bf16 %v1026_v56, %v1026_v56  ;;  %v1326_v58 = vpop.f32.mrb[29].mxu0 }
 0x317   : > { %v1029_v59 = vpop.f32.mrb[30].mxu0 }
 0x318   : > { %1093 = vst.msk [vmem:[%s1580_s27 + $0x18] sm:$0xf] %vm1086_vm4, %v1084_v57  ;;  %v1327_v60 = vpop.f32.mrb[31].mxu0  ;;  %v1072_v61 = vpop.f32.mrb[28].mxu1 }
 0x319   : > { %v1085_v62 = vpack.c.bf16 %v1072_v61, %v1072_v61  ;;  %v1332_v63 = vpop.f32.mrb[29].mxu1 }
 0x31a   : > { %v1075_v1 = vpop.f32.mrb[30].mxu1 }
 0x31b   : > { %1094 = vst.msk [vmem:[%s1580_s27 + $0x1c] sm:$0xf] %vm1086_vm4, %v1085_v62  ;;  %v1333_v2 = vpop.f32.mrb[31].mxu1 }
 0x31c PF: > { %s13_s12 = sadd.s32 1, %s1382_s12  }
 0x31d   : > { %p10_p4 = scmp.ge.s32.totalorder %s13_s12, 4  }
 0x31f   :  { %12 = sbr.rel (!%p10_p4) target bundleno = 1 (0x1), region = 68 }

// kernel: _lambda_.5
= control target key start
LH: loop header
LB: loop body
LE: loop exit
PB: predicated region body
PF: predicated region fallthrough
CT: control target
= control target key end

     0   :  { %s1712_s0 = inlined_call_operand.vmem [shape: f32[32,128], index: 0, kind: input, shape index: {}]   ;;  %s1713_s1 = inlined_call_operand.vmem [shape: bf16[32,128], index: 1, kind: input, shape index: {}]   ;;  %s1714_s2 = inlined_call_operand.vmem [shape: bf16[128,128], index: 2, kind: input, shape index: {}]   ;;  %s1715_s3 = inlined_call_operand.vmem [shape: f32[1,128], index: 3, kind: input, shape index: {}]   ;;  %s1716_s4 = inlined_call_operand.vmem [shape: f32[1,128], index: 4, kind: input, shape index: {}]   ;;  %s1717_s5 = inlined_call_operand.vmem [shape: f32[1,128], index: 5, kind: input, shape index: {}]   ;;  %s1718_s6 = inlined_call_operand.vmem [shape: bf16[128,256], index: 6, kind: input, shape index: {}]   ;;  %s1719_s7 = inlined_call_operand.vmem [shape: f32[1,256], index: 7, kind: input, shape index: {}]   ;;  %s1720_s8 = inlined_call_operand.vmem [shape: bf16[256,128], index: 8, kind: input, shape index: {}]   ;;  %s1721_s9 = inlined_call_operand.vmem [shape: f32[1,128], index: 9, kind: input, shape index: {}]   ;;  %s1722_s10 = inlined_call_operand.vmem [shape: f32[1,128], index: 10, kind: input, shape index: {}]   ;;  %s1723_s11 = inlined_call_operand.vmem [shape: f32[1,128], index: 11, kind: input, shape index: {}]   ;;  %s1724_s12 = inlined_call_operand.hbm [shape: f32[32,128], index: 12, kind: output, shape index: {}]  }
   0x1   :  { %1726 = sst [smem:[#allocation7_spill]] %s1713_s1 }
   0x2   :  { %17 = vsyncpa [#allocation3], 0 }
   0x3   :  { %19 = vsyncpa [#allocation3 + $0x1], 0  ;;  %s1458_s21 = smov 0   ;;  %s1460_s22 = smov 0  }
   0x4   :  { %s1462_s23 = smov 0   ;;  %s1464_s24 = smov 0  }
   0x5 LB: > { %1727 = sst [smem:[#allocation5_spill]] %s1381_s23  ;;  %s1479_s25 = sadd.s32 4294967295, %s1385_s24   ;;  %s1385_s24 = sphi %s1464_s24, %s1736_s24   ;;  %s1381_s23 = sphi %s1462_s23, %s1733_s23   ;;  %s1377_s22 = sphi %s1460_s22, %s1735_s22   ;;  %s1373_s21 = sphi %s1458_s21, %s1734_s21  }
   0x6   : > { %s1101_s26 = sadd.s32 4294967294, %s1385_s24   ;;  %s1483_s27 = sadd.s32 1, %s1385_s24  }
   0x7   : > { %s294_s28 = sadd.s32 1, %s1381_s23  ;;  %s291_s29 = ssub.s32 %s1385_s24, %s1483_s27 }
   0x8   : > { %p304_p0 = scmp.ne.s32.totalorder %s1381_s23, %s1377_s22  ;;  %p292_p1 = scmp.eq.s32.totalorder %s291_s29, 0 }
   0x9   : > { %p305_p2 = scmp.eq.s32.totalorder %s1479_s25, 1  ;;  %p310_p3 = scmp.ne.s32.totalorder %s1377_s22, %s1373_s21 }
   0xa   : > { %p311_p4 = scmp.eq.s32.totalorder %s1101_s26, 1  ;;  %p1104_p7 = scmp.ge.s32.totalorder %s1385_s24, 1 }
   0xb   : > { %s1494_s30 = scalar_select %p292_p1, %s1381_s23, %s294_s28  }
   0xc   : > { %p1496_p5 = por %p305_p2, %p304_p0  ;;  %p1500_p6 = por %p311_p4, %p310_p3 }
   0xd   : > { %1728 = sst [smem:[#allocation6_spill]] %s1494_s30  ;;  %p377_p8 = scmp.lt.s32.totalorder %s1385_s24, 3 }
   0xf   : > { %p378_p9 = pnand %p1104_p7, %p377_p8 }
  0x10   : > { %v1258_v0 = vld [vmem:[%s1714_s2] sm:$0xff] (!%p378_p9)   ;;  %v1387_v1 = vmov (!%p378_p9), 0.0   ;;  %v1259_v2 = vld [vmem:[%s1714_s2 + $0x8] sm:$0xff] (!%p378_p9)   ;;  %vm1388_vm0 = vmmov (!%p378_p9), 0   ;;  %s1106_s19 = sshll.u32 (!%p378_p9), %s1479_s25, 1  ;;  %v1260_v3 = vld [vmem:[%s1714_s2 + $0x10] sm:$0xff] (!%p378_p9)  }
  0x11   : > { %381 = sbr.rel (%p378_p9) target bundleno = 1374 (0x55e), region = 68  ;;  %1194 = vmatprep.subr.bf16.mxu0 (!%p378_p9), %v1387_v1  ;;  %1210 = vmatprep.mubr.msk.bf16.mxu0 (!%p378_p9), %vm1388_vm0, %v1387_v1  ;;  %p425_p10 = scmp.lt.s32.totalorder (!%p378_p9), %s1106_s19, 3  ;;  %v1261_v4 = vld [vmem:[%s1714_s2 + $0x18] sm:$0xff] (!%p378_p9)   ;;  %v1262_v5 = vld [vmem:[%s1714_s2 + $0x20] sm:$0xff] (!%p378_p9)   ;;  %v1263_v6 = vld [vmem:[%s1714_s2 + $0x28] sm:$0xff] (!%p378_p9)   ;;  %v1389_v40 = vmov (!%p378_p9), 0  }
  0x12   : > { %1195 = vmatpush3.bf16.msra.mxu0 (!%p378_p9), %v1258_v0  ;;  %s1731_s1 = sld [smem:[#allocation7_spill]] (!%p378_p9)  ;;  %v1264_v7 = vld [vmem:[%s1714_s2 + $0x30] sm:$0xff] (!%p378_p9)   ;;  %v1265_v8 = vld [vmem:[%s1714_s2 + $0x38] sm:$0xff] (!%p378_p9)   ;;  %v1110_v10 = vld [vmem:[%s1715_s3] ss:$0 sm:$0xff] (!%p378_p9)  ;;  %744 = vmatprep.mubr.bf16.mxu1 (!%p378_p9), %v1389_v40  ;;  %s1162_s15 = sshll.u32 (!%p378_p9), %s1479_s25, 8 }
  0x13   : > { %1196 = vmatprep.subr.bf16.mxu0 (!%p378_p9), %v1387_v1  ;;  %v1267_v21 = vld [vmem:[%s1718_s6 + $0x4] ss:$8 sps:$4 sm:$0xff] (!%p378_p9)   ;;  %v1269_v22 = vld [vmem:[%s1718_s6] ss:$8 sps:$4 sm:$0xff] (!%p378_p9)   ;;  %v1270_v23 = vld [vmem:[%s1718_s6 + $0x14] ss:$8 sps:$4 sm:$0xff] (!%p378_p9)   ;;  %s1667_s26 = scalar_lea.hbm (!%p378_p9), %s1724_s12, %s1162_s15 }
  0x14   : > { %712 = vmatprep.subr.bf16.mxu1 (!%p378_p9), %v1267_v21  ;;  %v1272_v32 = vld [vmem:[%s1718_s6 + $0x10] ss:$8 sps:$4 sm:$0xff] (!%p378_p9)   ;;  %v1273_v33 = vld [vmem:[%s1718_s6 + $0x24] ss:$8 sps:$4 sm:$0xff] (!%p378_p9)   ;;  %v1275_v34 = vld [vmem:[%s1718_s6 + $0x20] ss:$8 sps:$4 sm:$0xff] (!%p378_p9)  }
  0x15   : > { %713 = vmatpush1.bf16.msra.mxu1 (!%p378_p9), %v1269_v22  ;;  %v1276_v35 = vld [vmem:[%s1718_s6 + $0x34] ss:$8 sps:$4 sm:$0xff] (!%p378_p9)   ;;  %v1278_v36 = vld [vmem:[%s1718_s6 + $0x30] ss:$8 sps:$4 sm:$0xff] (!%p378_p9)   ;;  %v1279_v37 = vld [vmem:[%s1718_s6 + $0x44] ss:$8 sps:$4 sm:$0xff] (!%p378_p9)  }
  0x16   : > { %1197 = vmatpush3.bf16.msra.mxu0 (!%p378_p9), %v1259_v2  ;;  %714 = vmatprep.subr.bf16.mxu1 (!%p378_p9), %v1270_v23  ;;  %v1281_v38 = vld [vmem:[%s1718_s6 + $0x40] ss:$8 sps:$4 sm:$0xff] (!%p378_p9)   ;;  %v1282_v39 = vld [vmem:[%s1718_s6 + $0x54] ss:$8 sps:$4 sm:$0xff] (!%p378_p9)   ;;  %v1284_v41 = vld [vmem:[%s1718_s6 + $0x50] ss:$8 sps:$4 sm:$0xff] (!%p378_p9)  }
  0x17   : > { %1198 = vmatprep.subr.bf16.mxu0 (!%p378_p9), %v1387_v1  ;;  %v1285_v42 = vld [vmem:[%s1718_s6 + $0x64] ss:$8 sps:$4 sm:$0xff] (!%p378_p9)   ;;  %v1287_v43 = vld [vmem:[%s1718_s6 + $0x60] ss:$8 sps:$4 sm:$0xff] (!%p378_p9)   ;;  %v1288_v44 = vld [vmem:[%s1718_s6 + $0x74] ss:$8 sps:$4 sm:$0xff] (!%p378_p9)  }
  0x18   : > { %s1738_s19 = smov (!%p425_p10, %s1106_s19), 3  ;;  %v1290_v45 = vld [vmem:[%s1718_s6 + $0x70] ss:$8 sps:$4 sm:$0xff]   ;;  %v1120_v54 = vld [vmem:[%s1716_s4] ss:$0 sm:$0xff]  ;;  %v1294_v2 = vld [vmem:[%s1720_s8 + $0x8] sm:$0xff]  }
  0x19   : > { %s1109_s28 = sshll.u32 %s1738_s19, 2  ;;  %s1107_s23 = sshll.u32 %s1738_s19, 3  ;;  %715 = vmatpush1.bf16.msra.mxu1 %v1272_v32  ;;  %v1121_v58 = vld [vmem:[%s1717_s5] ss:$0 sm:$0xff] }
  0x1a   : > { %s434_s16 = scalar_lea.vmem %s1731_s1, %s1109_s28  ;;  %1199 = vmatpush3.bf16.msra.mxu0 %v1260_v3  ;;  %s428_s20 = scalar_lea.vmem %s1712_s0, %s1107_s23  ;;  %716 = vmatprep.subr.bf16.mxu1 %v1273_v33  ;;  %v1291_v63 = vld [vmem:[%s1720_s8 + $0x40] sm:$0xff]   ;;  %v1295_v3 = vld [vmem:[%s1720_s8 + $0x50] sm:$0xff]  }
  0x1b   : > { %1200 = vmatprep.subr.bf16.mxu0 %v1387_v1  ;;  %v1266_v9 = vld [vmem:[%s434_s16] sm:$0xff]   ;;  %v439_v19 = vld [vmem:[%s428_s20 + $0x8] sm:$0xff]  ;;  %s421_s19 = sand.u32 1, %s1377_s22  }
  0x1c   : > { %v438_v12 = vld [vmem:[%s428_s20] sm:$0xff]  ;;  %s1105_s16 = sshll.u32 %s421_s19, 4  ;;  %s1671_s29 = scalar_lea.sflag [#allocation3], %s421_s19 }
  0x1d   : > { %717 = vmatpush1.bf16.msra.mxu1 %v1275_v34  ;;  %v1292_v0 = vld [vmem:[%s1720_s8] sm:$0xff]   ;;  %s423_s23 = scalar_lea.vmem [#allocation2], %s1105_s16  ;;  %s1390_s16 = smov [#allocation2]  }
  0x1e   : > { %1201 = vmatpush3.bf16.msra.mxu0 %v1261_v4  ;;  %718 = vmatprep.subr.bf16.mxu1 %v1276_v35  ;;  %v1296_v4 = vld [vmem:[%s1720_s8 + $0x10] sm:$0xff]   ;;  %s1027_s17 = sshll.u32 %s423_s23, 4  ;;  %s1327_s28 = sshll.u32 %s1390_s16, 4  ;;  %s1669_s17 = int_to_ptr.vmem [resolvable:$true] %s1027_s17  ;;  %s1328_s28 = int_to_ptr.vmem [resolvable:$false] %s1327_s28 }
  0x1f   : > { %1202 = vmatprep.subr.bf16.mxu0 %v1387_v1  ;;  %s1323_s25 = scalar_lea.vmem %s1669_s17, 256  ;;  %s1329_s1 = scalar_lea.vmem %s1328_s28, 512 }
  0x20   : > { %p1324_p11 = scmp.ne.s32.totalorder %s1669_s17, %s1323_s25  ;;  %p1330_p0 = scmp.lt.s32.totalorder %s1669_s17, %s1328_s28 }
  0x21   : > { %719 = vmatpush1.bf16.msra.mxu1 %v1278_v36  ;;  %p1331_p1 = scmp.lt.s32.totalorder %s1329_s1, %s1323_s25 }
  0x22   : > { %1203 = vmatpush3.bf16.msra.mxu0 %v1262_v5  ;;  %720 = vmatprep.subr.bf16.mxu1 %v1279_v37  ;;  %v1297_v5 = vld [vmem:[%s1720_s8 + $0x58] sm:$0xff]   ;;  %p1325_p12 = pnand %p1324_p11, %p1496_p5 }
  0x23   : > { %1204 = vmatprep.subr.bf16.mxu0 %v1387_v1  ;;  %p1332_p2 = por %p1331_p1, %p1330_p0 }
  0x24   : > { %p1326_p13 = pneg %p1325_p12 }
  0x25   : > { %721 = vmatpush1.bf16.msra.mxu1 %v1281_v38 }
  0x26   : > { %1205 = vmatpush3.bf16.msra.mxu0 %v1263_v6  ;;  %722 = vmatprep.subr.bf16.mxu1 %v1282_v39  ;;  %v1298_v6 = vld [vmem:[%s1720_s8 + $0x18] sm:$0xff]   ;;  %p1333_p3 = pnand %p1332_p2, %p1326_p13 }
  0x27   : > { %1206 = vmatprep.subr.bf16.mxu0 %v1387_v1 }
  0x29   : > { %723 = vmatpush1.bf16.msra.mxu1 %v1284_v41 }
  0x2a   : > { %1207 = vmatpush3.bf16.msra.mxu0 %v1264_v7  ;;  %724 = vmatprep.subr.bf16.mxu1 %v1285_v42  ;;  %v1299_v7 = vld [vmem:[%s1720_s8 + $0x60] sm:$0xff]  }
  0x2b   : > { %1208 = vmatprep.subr.bf16.mxu0 %v1387_v1  ;;  %v1293_v1 = vld [vmem:[%s1720_s8 + $0x48] sm:$0xff]  }
  0x2d   : > { %725 = vmatpush1.bf16.msra.mxu1 %v1287_v43 }
  0x2e   : > { %1209 = vmatpush3.bf16.msra.mxu0 %v1265_v8  ;;  %726 = vmatprep.subr.bf16.mxu1 %v1288_v44  ;;  %v1300_v8 = vld [vmem:[%s1720_s8 + $0x20] sm:$0xff]  }
  0x2f   : > { %1172 = vmatprep.subr.bf16.mxu0 %v1291_v63 }
  0x31   : > { %1211 = vmatmul.mubr.bf16.vlgmr.msra.gmra.mrb[0].mxu0 %v1266_v9  ;;  %727 = vmatpush1.bf16.msra.mxu1 %v1290_v45  ;;  %v1301_v9 = vld [vmem:[%s1720_s8 + $0x68] sm:$0xff]  }
  0x32   : > { %1173 = vmatpush3.bf16.msra.mxu0 %v1292_v0 }
  0x33   : > { %1174 = vmatprep.subr.bf16.mxu0 %v1293_v1 }
  0x36   : > { %1175 = vmatpush3.bf16.msra.mxu0 %v1294_v2 }
  0x37   : > { %1176 = vmatprep.subr.bf16.mxu0 %v1295_v3 }
  0x3a   : > { %1177 = vmatpush3.bf16.msra.mxu0 %v1296_v4 }
  0x3b   : > { %1178 = vmatprep.subr.bf16.mxu0 %v1297_v5 }
  0x3e   : > { %1179 = vmatpush3.bf16.msra.mxu0 %v1298_v6 }
  0x3f   : > { %1180 = vmatprep.subr.bf16.mxu0 %v1299_v7  ;;  %v1138_v7 = vld [vmem:[%s1721_s9] ss:$0 sm:$0xff] }
  0x42   : > { %1181 = vmatpush3.bf16.msra.mxu0 %v1300_v8 }
  0x43   : > { %1182 = vmatprep.subr.bf16.mxu0 %v1301_v9 }
 0x104   : > { %v553_v11 = vpop.f32.mrb[0].mxu0 }
 0x105   : > { %v554_v13 = vadd.f32 %v1110_v10, %v553_v11  ;;  %v1212_v14 = vpop.f32.mrb[1].mxu0  ;;  %v1303_v11 = vld [vmem:[%s1720_s8 + $0x70] sm:$0xff]  }
 0x106   : > { %v556_v15 = vpop.f32.mrb[2].mxu0  ;;  %v1306_v14 = vld [vmem:[%s1720_s8 + $0x38] sm:$0xff]  }
 0x107   : > { %v557_v16 = vadd.f32 %v1110_v10, %v556_v15  ;;  %v1213_v17 = vpop.f32.mrb[3].mxu0  ;;  %v560_v18 = vadd.f32 %v554_v13, %v438_v12  ;;  %v1302_v10 = vld [vmem:[%s1720_s8 + $0x28] sm:$0xff]   ;;  %v1304_v12 = vld [vmem:[%s1720_s8 + $0x30] sm:$0xff]   ;;  %v1305_v13 = vld [vmem:[%s1720_s8 + $0x78] sm:$0xff]   ;;  %v622_v15 = vlaneseq }
 0x108   : > { %1183 = vmatpush3.bf16.msra.mxu0 %v1302_v10 }
 0x109   : > { %564 = vadd.xlane.f32.xlu0 %v560_v18  ;;  %v561_v20 = vadd.f32 %v557_v16, %v439_v19  ;;  %1184 = vmatprep.subr.bf16.mxu0 %v1303_v11  ;;  %v623_v16 = vshrl.u32 %v622_v15, 7 }
 0x10b   : > { %v624_v17 = vsub.s32 0, %v623_v16  ;;  %v628_v19 = vsub.s32 1, %v623_v16 }
 0x10c   : > { %1185 = vmatpush3.bf16.msra.mxu0 %v1304_v12 }
 0x10d   : > { %566 = vadd.xlane.f32.xlu0 %v561_v20  ;;  %1186 = vmatprep.subr.bf16.mxu0 %v1305_v13 }
 0x110   : > { %1187 = vmatpush3.bf16.msra.mxu0 %v1306_v14 }
 0x196   : > { %v565_v24 = vpop.xlane.xlu0 %564 }
 0x197   : > { %v569_v25 = vmul.f32 0.0078125, %v565_v24 }
 0x199   : > { %v571_v26 = vsub.f32 %v560_v18, %v569_v25  ;;  %v620_v18 = vld [vmem:[%s1719_s7] sm:$0x3] }
 0x19a   : > { %v567_v27 = vpop.xlane.xlu0 %566  ;;  %v629_v21 = vrot.slane %v620_v18, %v628_v19 }
 0x19b   : > { %v570_v28 = vmul.f32 0.0078125, %v567_v27  ;;  %v573_v29 = vmul.f32 %v571_v26, %v571_v26 }
 0x19d   : > { %v572_v30 = vsub.f32 %v561_v20, %v570_v28  ;;  %575 = vadd.xlane.f32.xlu1 %v573_v29  ;;  %v625_v20 = vrot.slane %v620_v18, %v624_v17 }
 0x19f   : > { %v574_v31 = vmul.f32 %v572_v30, %v572_v30 }
 0x1a1   : > { %577 = vadd.xlane.f32.xlu1 %v574_v31 }
 0x22a   : > { %v576_v46 = vpop.xlane.xlu1 %575 }
 0x22b   : > { %v579_v47 = vmul.f32 0.0078125, %v576_v46 }
 0x22d   : > { %v581_v48 = vadd.f32 1e-05, %v579_v47 }
 0x22e   : > { %v578_v49 = vpop.xlane.xlu1 %577 }
 0x22f   : > { %1307 = vrsqrt.f32 %v581_v48  ;;  %v580_v50 = vmul.f32 0.0078125, %v578_v49 }
 0x231   : > { %v582_v51 = vadd.f32 1e-05, %v580_v50 }
 0x233   : > { %1309 = vrsqrt.f32 %v582_v51 }
 0x239   : > { %v1308_v52 = vpop.eup %1307 }
 0x23a   : > { %v585_v53 = vmul.f32 %v1308_v52, %v571_v26 }
 0x23c   : > { %v593_v57 = vmul.f32 %v1120_v54, %v585_v53 }
 0x23d   : > { %v1310_v55 = vpop.eup %1309 }
 0x23e   : > { %v586_v56 = vmul.f32 %v1310_v55, %v572_v30  ;;  %v1594_v60 = vadd.f32 %v1121_v58, %v593_v57 }
 0x240   : > { %v594_v59 = vmul.f32 %v1120_v54, %v586_v56 }
 0x242   : > { %v1596_v61 = vadd.f32 %v1121_v58, %v594_v59 }
 0x244   : > { %v603_v62 = vpack.c.bf16 %v1596_v61, %v1594_v60 }
 0x246   : > { %745 = vmatmul.mubr.bf16.vlgmr.msra.gmra.mrb[0].mxu1 %v603_v62 }
 0x319   : > { %v746_v22 = vpop.f32.mrb[0].mxu1 }
 0x31a   : > { %v747_v23 = vadd.f32 %v746_v22, %v625_v20  ;;  %v748_v24 = vpop.f32.mrb[1].mxu1 }
 0x31b   : > { %v749_v25 = vadd.f32 %v748_v24, %v629_v21  ;;  %v750_v26 = vpop.f32.mrb[2].mxu1 }
 0x31c   : > { %v759_v27 = vmul.f32 0.044715, %v747_v23  ;;  %v751_v28 = vadd.f32 %v750_v26, %v625_v20  ;;  %v752_v29 = vpop.f32.mrb[3].mxu1  ;;  %v755_v56 = vmul.f32 0.5, %v747_v23 }
 0x31d   : > { %v760_v30 = vmul.f32 0.044715, %v749_v25  ;;  %v753_v31 = vadd.f32 %v752_v29, %v629_v21  ;;  %v756_v59 = vmul.f32 0.5, %v749_v25 }
 0x31e   : > { %v763_v32 = vmul.f32 %v759_v27, %v747_v23  ;;  %v761_v33 = vmul.f32 0.044715, %v751_v28  ;;  %v757_v57 = vmul.f32 0.5, %v751_v28 }
 0x31f   : > { %v764_v34 = vmul.f32 %v760_v30, %v749_v25  ;;  %v762_v35 = vmul.f32 0.044715, %v753_v31  ;;  %v758_v62 = vmul.f32 0.5, %v753_v31  ;;  %v1155_v30 = vld [vmem:[%s1722_s10] ss:$0 sm:$0xff] }
 0x320   : > { %v767_v36 = vmul.f32 %v763_v32, %v747_v23  ;;  %v765_v37 = vmul.f32 %v761_v33, %v751_v28  ;;  %v1156_v33 = vld [vmem:[%s1723_s11] ss:$0 sm:$0xff] }
 0x321   : > { %v768_v38 = vmul.f32 %v764_v34, %v749_v25  ;;  %v766_v39 = vmul.f32 %v762_v35, %v753_v31 }
 0x322   : > { %v771_v40 = vadd.f32 %v767_v36, %v747_v23  ;;  %v769_v41 = vmul.f32 %v765_v37, %v751_v28 }
 0x323   : > { %v770_v42 = vmul.f32 %v766_v39, %v753_v31  ;;  %v772_v43 = vadd.f32 %v768_v38, %v749_v25 }
 0x324   : > { %v775_v44 = vmul.f32 0.7978846, %v771_v40  ;;  %v773_v45 = vadd.f32 %v769_v41, %v751_v28 }
 0x325   : > { %v774_v46 = vadd.f32 %v770_v42, %v753_v31  ;;  %v776_v47 = vmul.f32 0.7978846, %v772_v43 }
 0x326   : > { %1311 = vtanh.f32 %v775_v44  ;;  %v777_v48 = vmul.f32 0.7978846, %v773_v45 }
 0x327   : > { %v778_v49 = vmul.f32 0.7978846, %v774_v46  ;;  %1313 = vtanh.f32 %v776_v47 }
 0x328   : > { %1315 = vtanh.f32 %v777_v48 }
 0x329   : > { %1317 = vtanh.f32 %v778_v49 }
 0x330   : > { %v1312_v50 = vpop.eup %1311 }
 0x331   : > { %v1314_v51 = vpop.eup %1313  ;;  %v783_v52 = vadd.f32 1.0, %v1312_v50 }
 0x332   : > { %v1316_v53 = vpop.eup %1315  ;;  %v784_v54 = vadd.f32 1.0, %v1314_v51 }
 0x333   : > { %v1318_v55 = vpop.eup %1317  ;;  %v785_v58 = vadd.f32 1.0, %v1316_v53  ;;  %v787_v0 = vmul.f32 %v783_v52, %v755_v56 }
 0x334   : > { %v786_v63 = vadd.f32 1.0, %v1318_v55  ;;  %v788_v2 = vmul.f32 %v784_v54, %v756_v59 }
 0x335   : > { %v789_v1 = vmul.f32 %v785_v58, %v757_v57 }
 0x336   : > { %v790_v3 = vmul.f32 %v786_v63, %v758_v62 }
 0x337   : > { %v791_v4 = vpack.c.bf16 %v789_v1, %v787_v0 }
 0x338   : > { %v792_v5 = vpack.c.bf16 %v790_v3, %v788_v2 }
 0x33a   : > { %960 = vmatprep.mubr.bf16.mxu0 %v792_v5 }
 0x33b   : > { %961 = vmatmul.mubr.bf16.vlgmr.msra.gmra.mrb[4].mxu0 %v791_v4 }
 0x40e   : > { %v1188_v6 = vpop.f32.mrb[4].mxu0 }
 0x40f   : > { %v1189_v8 = vpop.f32.mrb[5].mxu0 }
 0x410   : > { %v1190_v9 = vadd.f32 %v1189_v8, %v1188_v6  ;;  %v1191_v10 = vpop.f32.mrb[6].mxu0 }
 0x411   : > { %v1192_v11 = vpop.f32.mrb[7].mxu0 }
 0x412   : > { %v963_v12 = vadd.f32 %v1190_v9, %v1138_v7  ;;  %v1193_v13 = vadd.f32 %v1192_v11, %v1191_v10 }
 0x414   : > { %v966_v14 = vadd.f32 %v1193_v13, %v1138_v7  ;;  %v969_v15 = vadd.f32 %v963_v12, %v1594_v60 }
 0x416   : > { %973 = vadd.xlane.f32.xlu0 %v969_v15  ;;  %v970_v16 = vadd.f32 %v966_v14, %v1596_v61 }
 0x418   : > { %975 = vadd.xlane.f32.xlu1 %v970_v16 }
 0x4a3   : > { %v974_v17 = vpop.xlane.xlu0 %973 }
 0x4a4   : > { %v977_v18 = vmul.f32 0.0078125, %v974_v17 }
 0x4a5   : > { %v976_v19 = vpop.xlane.xlu1 %975 }
 0x4a6   : > { %v979_v20 = vsub.f32 %v969_v15, %v977_v18  ;;  %v978_v21 = vmul.f32 0.0078125, %v976_v19 }
 0x4a8   : > { %v980_v22 = vsub.f32 %v970_v16, %v978_v21  ;;  %v981_v23 = vmul.f32 %v979_v20, %v979_v20 }
 0x4aa   : > { %983 = vadd.xlane.f32.xlu0 %v981_v23  ;;  %v982_v24 = vmul.f32 %v980_v22, %v980_v22 }
 0x4ac   : > { %985 = vadd.xlane.f32.xlu1 %v982_v24 }
 0x537   : > { %v984_v25 = vpop.xlane.xlu0 %983 }
 0x538   : > { %v987_v26 = vmul.f32 0.0078125, %v984_v25 }
 0x539   : > { %v986_v27 = vpop.xlane.xlu1 %985 }
 0x53a   : > { %v989_v60 = vadd.f32 1e-05, %v987_v26  ;;  %v988_v28 = vmul.f32 0.0078125, %v986_v27 }
 0x53c   : > { %1319 = vrsqrt.f32 %v989_v60  ;;  %v990_v61 = vadd.f32 1e-05, %v988_v28 }
 0x53e   : > { %1321 = vrsqrt.f32 %v990_v61 }
 0x546   : > { %v1320_v29 = vpop.eup %1319 }
 0x547   : > { %v993_v31 = vmul.f32 %v1320_v29, %v979_v20 }
 0x548   : > { %v1322_v32 = vpop.eup %1321 }
 0x549   : > { %v1001_v34 = vmul.f32 %v1155_v30, %v993_v31  ;;  %v994_v35 = vmul.f32 %v1322_v32, %v980_v22 }
 0x54b   : > { %v1002_v36 = vmul.f32 %v1155_v30, %v994_v35  ;;  %v1009_v37 = vadd.f32 %v1156_v33, %v1001_v34 }
 0x54d   : > { %v1010_v38 = vadd.f32 %v1156_v33, %v1002_v36  ;;  %1011 = vst [vmem:[%s423_s23] sm:$0xff] %v1009_v37 }
 0x54f   : > { %1012 = vst [vmem:[%s423_s23 + $0x8] sm:$0xff] %v1010_v38 }
 0x550   : > { %1336 = shalt.err (!%p1333_p3)
}
 0x551   : > { %s1337_s19 = scalar_lea.hbm %s1667_s26, 256  ;;  %s1341_s23 = scalar_lea.hbm %s1724_s12, 512 }
 0x552   : > { %p1338_p4 = scmp.ne.s32.totalorder %s1667_s26, %s1337_s19  ;;  %p1342_p9 = scmp.lt.u32.totalorder %s1667_s26, %s1724_s12 }
 0x553   : > { %p1343_p10 = scmp.lt.u32.totalorder %s1341_s23, %s1337_s19  ;;  %p1345_p12 = scmp.lt.u32.totalorder %s1337_s19, %s1667_s26 }
 0x554   : > { %p1339_p7 = pnand %p1338_p4, %p1496_p5 }
 0x555   : > { %p1344_p11 = por %p1343_p10, %p1342_p9 }
 0x556   : > { %p1340_p8 = pneg %p1339_p7 }
 0x557   : > { %p1346_p13 = por %p1345_p12, %p1344_p11 }
 0x559   : > { %p1347_p0 = pnand %p1346_p13, %p1340_p8 }
 0x55b   : > { %1350 = shalt.err (!%p1347_p0)
}
 0x55c   : > { %s1391_s25 = smov 128   ;;  %s1392_s16 = smov 8  }
 0x55d   : > { %1214 = dma.vmem_to_hbm [thread:$0]  (%p1496_p5), %s1669_s17, 256, %s1667_s26, %s1671_s29, %s1391_s25, %s1391_s25, %s1392_s16  }
 0x55e PF: > { %p1220_p1 = scmp.ge.s32.totalorder %s1385_s24, 2  ;;  %s1042_s28 = sand.u32 1, %s1373_s21  }
 0x55f   : > { %s1043_s1 = scalar_lea.sflag [#allocation3], %s1042_s28 }
 0x560   : > { %p1217_p2 = pnand %p1220_p1, %p1500_p6 }
 0x562   : > { %1368 = dma.done.wait (!%p1217_p2), %s1043_s1, 256  }
 0x563   : > { %1370 = vsyncadd (!%p1217_p2), %s1043_s1, 4294967040  ;;  %s1732_s19 = sld [smem:[#allocation5_spill]]  ;;  %s1733_s23 = sld [smem:[#allocation6_spill]] }
 0x564   : > { %p22_p3 = scmp.ge.s32.totalorder %s1483_s27, 4   ;;  %s1734_s21 = smov %s1377_s22 }
 0x565   : > { %s1736_s24 = smov %s1483_s27 }
 0x566   :  { %24 = sbr.rel (!%p22_p3) target bundleno = 5 (0x5), region = 106 }
 0x569   : > { %s1735_s22 = smov %s1732_s19 }
 0x56d   :  { %1048 = vsyncpa [#allocation3], 1 }
 0x56e   :  { %1050 = vsyncpa [#allocation3 + $0x1], 1 }

</bundles_post_ra>
